<compile_context>
chip_gen: v7x
topology: tpu7x:2x2x1
jax: 0.10.0
libtpu: 0.0.40
codegen_flags: <defaults>
</compile_context>

<pallas_src>
import functools

import jax
import jax.numpy as jnp
from jax.experimental import pallas as pl
from jax.experimental.pallas import tpu as pltpu


def _reglstm_kernel(num_layers, hid_dim, seq_len, batch, out_dim, *refs):
    """Whole forward pass in one kernel invocation (small shapes, no grid).

    ref order:
      x_ref (S, B, inp_dim) f32,
      layer 0:  w_ih0 (I, 4H) bf16, w_hh0 (H, 4H) bf16, b0 (1, 4H) f32,
      layer l>0: w_fused_l (2H, 4H) bf16, b_l (1, 4H) f32          (x (L-1)),
      head: w1 (H, H) bf16, b1 (1, H) f32, w2 (H, O) bf16, b2 (1, O) f32,
      out_ref (S, B, O) f32
    """
    H, S, B, L, O = hid_dim, seq_len, batch, num_layers, out_dim
    G = 4 * H

    x_ref = refs[0]
    w_ih0_ref, w_hh0_ref, b0_ref = refs[1], refs[2], refs[3]
    idx = 4
    fused_refs = []
    for _ in range(L - 1):
        fused_refs.append((refs[idx], refs[idx + 1]))
        idx += 2
    w1_ref, b1_ref = refs[idx], refs[idx + 1]
    w2_ref, b2_ref = refs[idx + 2], refs[idx + 3]
    out_ref = refs[idx + 4]

    # Per-lane post-affine so ONE full-width tanh implements every gate
    # nonlinearity: i/f/o weight columns were pre-scaled by 0.5 in the wrapper,
    # so 0.5*tanh(0.5*x) + 0.5 == sigmoid(x) on those lanes; g lanes keep
    # tanh(x).  Hoisted (and pre-broadcast to (B, G)) out of the recurrence.
    lane = jax.lax.broadcasted_iota(jnp.int32, (B, G), 1)
    is_g = jnp.logical_and(lane >= 2 * H, lane < 3 * H)
    post_scale = jnp.where(is_g, jnp.float32(1.0), jnp.float32(0.5))
    post_off = jnp.where(is_g, jnp.float32(0.0), jnp.float32(0.5))

    # Hoisted weight loads (bf16) and pre-broadcast fused biases (f32).
    w_hh0 = w_hh0_ref[...]
    fused = [(w_ref[...], jnp.broadcast_to(b_ref[...], (B, G)))
             for (w_ref, b_ref) in fused_refs]

    # Layer-0 input projection: one batched MXU matmul over ALL S*B rows with
    # the bias folded in, so only h @ W_hh remains inside layer 0's recurrence.
    x_flat = x_ref[...].reshape(S * B, x_ref.shape[-1]).astype(jnp.bfloat16)
    gx0 = (jnp.dot(x_flat, w_ih0_ref[...], preferred_element_type=jnp.float32)
           + b0_ref[...]).reshape(S, B, G)

    def cell(gates, c_prev):
        # One EUP push for all four gates (f32 element-wise math).
        act = jnp.tanh(gates) * post_scale + post_off
        i_g = act[:, 0 * H:1 * H]
        f_g = act[:, 1 * H:2 * H]
        g_g = act[:, 2 * H:3 * H]
        o_g = act[:, 3 * H:4 * H]
        c_new = f_g * c_prev + i_g * g_g
        h_new = o_g * jnp.tanh(c_new)
        return h_new, c_new

    h = [jnp.zeros((B, H), jnp.float32) for _ in range(L)]
    c = [jnp.zeros((B, H), jnp.float32) for _ in range(L)]
    outs = [[None] * S for _ in range(L)]

    # Wavefront schedule: step k updates layer l at time t = k - l.  The
    # matmuls of different layers within one step have no data dependence and
    # pipeline through the MXU; the serial chain is S + L - 1 steps.
    # Fully unrolled: S and L are static and small.
    for k in range(S + L - 1):
        for l in range(L):
            t = k - l
            if t < 0 or t >= S:
                continue
            if l == 0:
                gates = gx0[t] + jnp.dot(h[0].astype(jnp.bfloat16), w_hh0,
                                         preferred_element_type=jnp.float32)
            else:
                # Fused input+recurrent projection: [h_below_t, h_{t-1}] @ [W_ih; W_hh].
                w_f, b_f = fused[l - 1]
                xin = jnp.concatenate([outs[l - 1][t], h[l]],
                                      axis=1).astype(jnp.bfloat16)
                gates = jnp.dot(xin, w_f,
                                preferred_element_type=jnp.float32) + b_f
            h[l], c[l] = cell(gates, c[l])
            outs[l][t] = h[l]

    # Regression head hoisted out of the recurrence: two batched MXU matmuls
    # over all S*B rows, single store of the full output.
    hid = jnp.stack(outs[L - 1], axis=0).reshape(S * B, H).astype(jnp.bfloat16)
    z = jnp.tanh(jnp.dot(hid, w1_ref[...], preferred_element_type=jnp.float32)
                 + b1_ref[...])
    y = (jnp.dot(z.astype(jnp.bfloat16), w2_ref[...],
                 preferred_element_type=jnp.float32) + b2_ref[...])
    out_ref[...] = y.reshape(S, B, O)


def init_params(key, inp_dim, out_dim, mid_dim, mid_layers):
    """Deterministic parameter init matching nn.LSTM / nn.Linear shapes.

    Weights are stored transposed (in_features, out_features) so the kernel
    computes x @ W; per-layer LSTM biases b_ih + b_hh are pre-summed.
    PyTorch gate order (i, f, g, o) is preserved.
    """
    H = mid_dim
    scale = 1.0 / jnp.sqrt(jnp.float32(H))
    params = {"lstm": [], "reg": {}}
    for l in range(mid_layers):
        in_feat = inp_dim if l == 0 else H
        key, k1, k2, k3, k4 = jax.random.split(key, 5)
        w_ih = jax.random.uniform(k1, (4 * H, in_feat), jnp.float32, -scale, scale)
        w_hh = jax.random.uniform(k2, (4 * H, H), jnp.float32, -scale, scale)
        b_ih = jax.random.uniform(k3, (4 * H,), jnp.float32, -scale, scale)
        b_hh = jax.random.uniform(k4, (4 * H,), jnp.float32, -scale, scale)
        params["lstm"].append({
            "w_ih_t": w_ih.T,                          # (in_feat, 4H)
            "w_hh_t": w_hh.T,                          # (H, 4H)
            "b": (b_ih + b_hh).reshape(1, 4 * H),      # (1, 4H)
        })
    key, k1, k2, k3, k4 = jax.random.split(key, 5)
    w1 = jax.random.uniform(k1, (H, H), jnp.float32, -scale, scale)
    b1 = jax.random.uniform(k2, (H,), jnp.float32, -scale, scale)
    s2 = 1.0 / jnp.sqrt(jnp.float32(H))
    w2 = jax.random.uniform(k3, (out_dim, H), jnp.float32, -s2, s2)
    b2 = jax.random.uniform(k4, (out_dim,), jnp.float32, -s2, s2)
    params["reg"] = {
        "w1_t": w1.T, "b1": b1.reshape(1, H),
        "w2_t": w2.T, "b2": b2.reshape(1, out_dim),
    }
    return params


def reg_lstm_forward(x, params, *, out_dim, mid_dim, mid_layers):
    """x: (batch, seq, inp_dim) float32 -> (batch, seq, out_dim) float32."""
    B, S, I = x.shape
    H, L = mid_dim, mid_layers

    # Pad batch to a multiple of 8 (f32 sublane); padded rows are discarded.
    B_pad = ((B + 7) // 8) * 8
    x32 = x.astype(jnp.float32)
    if B_pad != B:
        x32 = jnp.pad(x32, ((0, B_pad - B), (0, 0), (0, 0)))
    x_tm = jnp.transpose(x32, (1, 0, 2))  # time-major (S, B_pad, I)

    # Column pre-scale: 0.5 on i/f/o gate blocks (lets one in-kernel tanh plus
    # a per-lane affine implement sigmoid), 1.0 on the g block.  Exact in
    # binary, applied to W_ih, W_hh and the fused bias alike.
    col_scale = jnp.concatenate([
        jnp.full((2 * H,), 0.5, jnp.float32),   # i, f
        jnp.ones((H,), jnp.float32),            # g
        jnp.full((H,), 0.5, jnp.float32),       # o
    ])

    lp0 = params["lstm"][0]
    inputs = [
        x_tm,
        (lp0["w_ih_t"] * col_scale).astype(jnp.bfloat16),   # (I, 4H)
        (lp0["w_hh_t"] * col_scale).astype(jnp.bfloat16),   # (H, 4H)
        (lp0["b"] * col_scale).astype(jnp.float32),         # (1, 4H)
    ]
    for l in range(1, L):
        lp = params["lstm"][l]
        # Fused [W_ih; W_hh] so each recurrence step is ONE (B,2H)x(2H,4H) matmul.
        w_fused = jnp.concatenate([lp["w_ih_t"], lp["w_hh_t"]], axis=0)  # (2H, 4H)
        inputs += [(w_fused * col_scale).astype(jnp.bfloat16),
                   (lp["b"] * col_scale).astype(jnp.float32)]
    rp = params["reg"]
    inputs += [rp["w1_t"].astype(jnp.bfloat16), rp["b1"].astype(jnp.float32),
               rp["w2_t"].astype(jnp.bfloat16), rp["b2"].astype(jnp.float32)]

    vmem_spec = pl.BlockSpec(memory_space=pltpu.MemorySpace.VMEM)
    kernel = functools.partial(_reglstm_kernel, L, H, S, B_pad, out_dim)

    out_tm = pl.pallas_call(
        kernel,
        out_shape=jax.ShapeDtypeStruct((S, B_pad, out_dim), jnp.float32),
        in_specs=[vmem_spec] * len(inputs),
        out_specs=vmem_spec,
    )(*inputs)

    out = jnp.transpose(out_tm, (1, 0, 2))  # back to batch-first (B_pad, S, O)
    return out[:B]


def _reference_forward(x, params, *, out_dim, mid_dim, mid_layers):
    """Pure-JAX f32 reference (same math as the PyTorch module)."""
    B, S, I = x.shape
    H = mid_dim
    hs = [jnp.zeros((B, H), jnp.float32) for _ in range(mid_layers)]
    cs = [jnp.zeros((B, H), jnp.float32) for _ in range(mid_layers)]
    outs = []
    for t in range(S):
        inp = x[:, t, :]
        for l in range(mid_layers):
            lp = params["lstm"][l]
            gates = inp @ lp["w_ih_t"] + hs[l] @ lp["w_hh_t"] + lp["b"]
            i_g = jax.nn.sigmoid(gates[:, 0 * H:1 * H])
            f_g = jax.nn.sigmoid(gates[:, 1 * H:2 * H])
            g_g = jnp.tanh(gates[:, 2 * H:3 * H])
            o_g = jax.nn.sigmoid(gates[:, 3 * H:4 * H])
            cs[l] = f_g * cs[l] + i_g * g_g
            hs[l] = o_g * jnp.tanh(cs[l])
            inp = hs[l]
        rp = params["reg"]
        z = jnp.tanh(inp @ rp["w1_t"] + rp["b1"])
        outs.append(z @ rp["w2_t"] + rp["b2"])
    return jnp.stack(outs, axis=1)


if __name__ == "__main__":
    # Small, module-consistent shapes.
    batch, seq_len = 4, 8
    inp_dim, out_dim, mid_dim, mid_layers = 16, 4, 32, 2

    key = jax.random.PRNGKey(0)
    key, xk = jax.random.split(key)
    x = jax.random.normal(xk, (batch, seq_len, inp_dim), jnp.float32)
    params = init_params(key, inp_dim, out_dim, mid_dim, mid_layers)

    y = reg_lstm_forward(x, params, out_dim=out_dim, mid_dim=mid_dim,
                         mid_layers=mid_layers)
    y = jax.block_until_ready(y)
    assert y.shape == (batch, seq_len, out_dim), y.shape

    y_ref = jax.block_until_ready(
        _reference_forward(x, params, out_dim=out_dim, mid_dim=mid_dim,
                           mid_layers=mid_layers))
    # Tolerance accounts for bf16 MXU operands (f32 accumulation / elementwise).
    err = jnp.max(jnp.abs(y - y_ref))
    assert err < 2e-2, f"mismatch vs. JAX reference: {err}"

    print("KERNEL_OK")
</pallas_src>

<mosaic_0001>
module attributes {stable_mosaic.version = 11 : i64} {
  func.func @_reglstm_kernel(%arg0: memref<8x8x16xf32, #tpu.memory_space<vmem>>, %arg1: memref<16x128xbf16, #tpu.memory_space<vmem>>, %arg2: memref<32x128xbf16, #tpu.memory_space<vmem>>, %arg3: memref<1x128xf32, #tpu.memory_space<vmem>>, %arg4: memref<64x128xbf16, #tpu.memory_space<vmem>>, %arg5: memref<1x128xf32, #tpu.memory_space<vmem>>, %arg6: memref<32x32xbf16, #tpu.memory_space<vmem>>, %arg7: memref<1x32xf32, #tpu.memory_space<vmem>>, %arg8: memref<32x4xbf16, #tpu.memory_space<vmem>>, %arg9: memref<1x4xf32, #tpu.memory_space<vmem>>, %arg10: memref<8x8x4xf32, #tpu.memory_space<vmem>>) attributes {dimension_semantics = [], scalar_prefetch = 0 : i64, scratch_operands = 0 : i64, tpu.core_type = #tpu.core_type<tc>} {
    %0 = tpu.iota {dimensions = array<i32: 1>} : vector<8x128xi32>
    %c64_i32 = arith.constant 64 : i32
    %1 = vector.broadcast %c64_i32 : i32 to vector<8x128xi32>
    %2 = arith.cmpi sge, %0, %1 : vector<8x128xi32>
    %c96_i32 = arith.constant 96 : i32
    %3 = vector.broadcast %c96_i32 : i32 to vector<8x128xi32>
    %4 = arith.cmpi slt, %0, %3 : vector<8x128xi32>
    %5 = arith.andi %2, %4 : vector<8x128xi1>
    %cst = arith.constant 1.000000e+00 : f32
    %cst_0 = arith.constant 5.000000e-01 : f32
    %6 = vector.broadcast %cst : f32 to vector<8x128xf32>
    %7 = vector.broadcast %cst_0 : f32 to vector<8x128xf32>
    %8 = arith.select %5, %6, %7 : vector<8x128xi1>, vector<8x128xf32>
    %cst_1 = arith.constant 0.000000e+00 : f32
    %cst_2 = arith.constant 5.000000e-01 : f32
    %9 = vector.broadcast %cst_1 : f32 to vector<8x128xf32>
    %10 = vector.broadcast %cst_2 : f32 to vector<8x128xf32>
    %11 = arith.select %5, %9, %10 : vector<8x128xi1>, vector<8x128xf32>
    %c0 = arith.constant 0 : index
    %c0_3 = arith.constant 0 : index
    %12 = vector.load %arg2[%c0, %c0_3] : memref<32x128xbf16, #tpu.memory_space<vmem>>, vector<32x128xbf16>
    %c0_4 = arith.constant 0 : index
    %c0_5 = arith.constant 0 : index
    %13 = vector.load %arg4[%c0_4, %c0_5] : memref<64x128xbf16, #tpu.memory_space<vmem>>, vector<64x128xbf16>
    %c0_6 = arith.constant 0 : index
    %c0_7 = arith.constant 0 : index
    %14 = vector.load %arg5[%c0_6, %c0_7] : memref<1x128xf32, #tpu.memory_space<vmem>>, vector<1x128xf32>
    %15 = vector.shape_cast %14 : vector<1x128xf32> to vector<1x128xf32>
    %16 = vector.broadcast %15 : vector<1x128xf32> to vector<8x128xf32>
    %c0_8 = arith.constant 0 : index
    %c0_9 = arith.constant 0 : index
    %c0_10 = arith.constant 0 : index
    %17 = vector.load %arg0[%c0_8, %c0_9, %c0_10] : memref<8x8x16xf32, #tpu.memory_space<vmem>>, vector<8x8x16xf32>
    %18 = vector.shape_cast %17 : vector<8x8x16xf32> to vector<64x16xf32>
    %19 = arith.truncf %18 : vector<64x16xf32> to vector<64x16xbf16>
    %c0_11 = arith.constant 0 : index
    %c0_12 = arith.constant 0 : index
    %20 = vector.load %arg1[%c0_11, %c0_12] : memref<16x128xbf16, #tpu.memory_space<vmem>>, vector<16x128xbf16>
    %cst_13 = arith.constant dense<0.000000e+00> : vector<64x128xf32>
    %21 = tpu.matmul %19, %20, %cst_13 {dimension_numbers = #tpu.dot_dimension_numbers<[1], [0], [0], [1], [0, 0, 1, 1], [], []>} : vector<64x16xbf16>, vector<16x128xbf16>, vector<64x128xf32> -> vector<64x128xf32>
    %c0_14 = arith.constant 0 : index
    %c0_15 = arith.constant 0 : index
    %22 = vector.load %arg3[%c0_14, %c0_15] : memref<1x128xf32, #tpu.memory_space<vmem>>, vector<1x128xf32>
    %23 = vector.broadcast %22 : vector<1x128xf32> to vector<64x128xf32>
    %24 = arith.addf %21, %23 : vector<64x128xf32>
    %25 = vector.shape_cast %24 : vector<64x128xf32> to vector<8x8x128xf32>
    %cst_16 = arith.constant 0.000000e+00 : f32
    %26 = vector.broadcast %cst_16 : f32 to vector<8x32xf32>
    %cst_17 = arith.constant 0.000000e+00 : f32
    %27 = vector.broadcast %cst_17 : f32 to vector<8x32xf32>
    %cst_18 = arith.constant 0.000000e+00 : f32
    %28 = vector.broadcast %cst_18 : f32 to vector<8x32xf32>
    %cst_19 = arith.constant 0.000000e+00 : f32
    %29 = vector.broadcast %cst_19 : f32 to vector<8x32xf32>
    %30 = vector.extract_strided_slice %25 {offsets = [0, 0, 0], sizes = [1, 8, 128], strides = [1, 1, 1]} : vector<8x8x128xf32> to vector<1x8x128xf32>
    %31 = vector.shape_cast %30 : vector<1x8x128xf32> to vector<8x128xf32>
    %32 = arith.truncf %26 : vector<8x32xf32> to vector<8x32xbf16>
    %cst_20 = arith.constant dense<0.000000e+00> : vector<8x128xf32>
    %33 = tpu.matmul %32, %12, %cst_20 {dimension_numbers = #tpu.dot_dimension_numbers<[1], [0], [0], [1], [0, 0, 1, 1], [], []>} : vector<8x32xbf16>, vector<32x128xbf16>, vector<8x128xf32> -> vector<8x128xf32>
    %34 = arith.addf %31, %33 : vector<8x128xf32>
    %35 = math.tanh %34 : vector<8x128xf32>
    %36 = arith.mulf %35, %8 : vector<8x128xf32>
    %37 = arith.addf %36, %11 : vector<8x128xf32>
    %38 = vector.extract_strided_slice %37 {offsets = [0, 0], sizes = [8, 32], strides = [1, 1]} : vector<8x128xf32> to vector<8x32xf32>
    %39 = vector.extract_strided_slice %37 {offsets = [0, 32], sizes = [8, 32], strides = [1, 1]} : vector<8x128xf32> to vector<8x32xf32>
    %40 = vector.extract_strided_slice %37 {offsets = [0, 64], sizes = [8, 32], strides = [1, 1]} : vector<8x128xf32> to vector<8x32xf32>
    %41 = vector.extract_strided_slice %37 {offsets = [0, 96], sizes = [8, 32], strides = [1, 1]} : vector<8x128xf32> to vector<8x32xf32>
    %42 = arith.mulf %39, %28 : vector<8x32xf32>
    %43 = arith.mulf %38, %40 : vector<8x32xf32>
    %44 = arith.addf %42, %43 : vector<8x32xf32>
    %45 = math.tanh %44 : vector<8x32xf32>
    %46 = arith.mulf %41, %45 : vector<8x32xf32>
    %47 = vector.extract_strided_slice %25 {offsets = [1, 0, 0], sizes = [1, 8, 128], strides = [1, 1, 1]} : vector<8x8x128xf32> to vector<1x8x128xf32>
    %48 = vector.shape_cast %47 : vector<1x8x128xf32> to vector<8x128xf32>
    %49 = arith.truncf %46 : vector<8x32xf32> to vector<8x32xbf16>
    %cst_21 = arith.constant dense<0.000000e+00> : vector<8x128xf32>
    %50 = tpu.matmul %49, %12, %cst_21 {dimension_numbers = #tpu.dot_dimension_numbers<[1], [0], [0], [1], [0, 0, 1, 1], [], []>} : vector<8x32xbf16>, vector<32x128xbf16>, vector<8x128xf32> -> vector<8x128xf32>
    %51 = arith.addf %48, %50 : vector<8x128xf32>
    %52 = math.tanh %51 : vector<8x128xf32>
    %53 = arith.mulf %52, %8 : vector<8x128xf32>
    %54 = arith.addf %53, %11 : vector<8x128xf32>
    %55 = vector.extract_strided_slice %54 {offsets = [0, 0], sizes = [8, 32], strides = [1, 1]} : vector<8x128xf32> to vector<8x32xf32>
    %56 = vector.extract_strided_slice %54 {offsets = [0, 32], sizes = [8, 32], strides = [1, 1]} : vector<8x128xf32> to vector<8x32xf32>
    %57 = vector.extract_strided_slice %54 {offsets = [0, 64], sizes = [8, 32], strides = [1, 1]} : vector<8x128xf32> to vector<8x32xf32>
    %58 = vector.extract_strided_slice %54 {offsets = [0, 96], sizes = [8, 32], strides = [1, 1]} : vector<8x128xf32> to vector<8x32xf32>
    %59 = arith.mulf %56, %44 : vector<8x32xf32>
    %60 = arith.mulf %55, %57 : vector<8x32xf32>
    %61 = arith.addf %59, %60 : vector<8x32xf32>
    %62 = math.tanh %61 : vector<8x32xf32>
    %63 = arith.mulf %58, %62 : vector<8x32xf32>
    %64 = tpu.concatenate %46, %27 in 1 : vector<8x32xf32>, vector<8x32xf32> -> vector<8x64xf32>
    %65 = arith.truncf %64 : vector<8x64xf32> to vector<8x64xbf16>
    %cst_22 = arith.constant dense<0.000000e+00> : vector<8x128xf32>
    %66 = tpu.matmul %65, %13, %cst_22 {dimension_numbers = #tpu.dot_dimension_numbers<[1], [0], [0], [1], [0, 0, 1, 1], [], []>} : vector<8x64xbf16>, vector<64x128xbf16>, vector<8x128xf32> -> vector<8x128xf32>
    %67 = arith.addf %66, %16 : vector<8x128xf32>
    %68 = math.tanh %67 : vector<8x128xf32>
    %69 = arith.mulf %68, %8 : vector<8x128xf32>
    %70 = arith.addf %69, %11 : vector<8x128xf32>
    %71 = vector.extract_strided_slice %70 {offsets = [0, 0], sizes = [8, 32], strides = [1, 1]} : vector<8x128xf32> to vector<8x32xf32>
    %72 = vector.extract_strided_slice %70 {offsets = [0, 32], sizes = [8, 32], strides = [1, 1]} : vector<8x128xf32> to vector<8x32xf32>
    %73 = vector.extract_strided_slice %70 {offsets = [0, 64], sizes = [8, 32], strides = [1, 1]} : vector<8x128xf32> to vector<8x32xf32>
    %74 = vector.extract_strided_slice %70 {offsets = [0, 96], sizes = [8, 32], strides = [1, 1]} : vector<8x128xf32> to vector<8x32xf32>
    %75 = arith.mulf %72, %29 : vector<8x32xf32>
    %76 = arith.mulf %71, %73 : vector<8x32xf32>
    %77 = arith.addf %75, %76 : vector<8x32xf32>
    %78 = math.tanh %77 : vector<8x32xf32>
    %79 = arith.mulf %74, %78 : vector<8x32xf32>
    %80 = vector.extract_strided_slice %25 {offsets = [2, 0, 0], sizes = [1, 8, 128], strides = [1, 1, 1]} : vector<8x8x128xf32> to vector<1x8x128xf32>
    %81 = vector.shape_cast %80 : vector<1x8x128xf32> to vector<8x128xf32>
    %82 = arith.truncf %63 : vector<8x32xf32> to vector<8x32xbf16>
    %cst_23 = arith.constant dense<0.000000e+00> : vector<8x128xf32>
    %83 = tpu.matmul %82, %12, %cst_23 {dimension_numbers = #tpu.dot_dimension_numbers<[1], [0], [0], [1], [0, 0, 1, 1], [], []>} : vector<8x32xbf16>, vector<32x128xbf16>, vector<8x128xf32> -> vector<8x128xf32>
    %84 = arith.addf %81, %83 : vector<8x128xf32>
    %85 = math.tanh %84 : vector<8x128xf32>
    %86 = arith.mulf %85, %8 : vector<8x128xf32>
    %87 = arith.addf %86, %11 : vector<8x128xf32>
    %88 = vector.extract_strided_slice %87 {offsets = [0, 0], sizes = [8, 32], strides = [1, 1]} : vector<8x128xf32> to vector<8x32xf32>
    %89 = vector.extract_strided_slice %87 {offsets = [0, 32], sizes = [8, 32], strides = [1, 1]} : vector<8x128xf32> to vector<8x32xf32>
    %90 = vector.extract_strided_slice %87 {offsets = [0, 64], sizes = [8, 32], strides = [1, 1]} : vector<8x128xf32> to vector<8x32xf32>
    %91 = vector.extract_strided_slice %87 {offsets = [0, 96], sizes = [8, 32], strides = [1, 1]} : vector<8x128xf32> to vector<8x32xf32>
    %92 = arith.mulf %89, %61 : vector<8x32xf32>
    %93 = arith.mulf %88, %90 : vector<8x32xf32>
    %94 = arith.addf %92, %93 : vector<8x32xf32>
    %95 = math.tanh %94 : vector<8x32xf32>
    %96 = arith.mulf %91, %95 : vector<8x32xf32>
    %97 = tpu.concatenate %63, %79 in 1 : vector<8x32xf32>, vector<8x32xf32> -> vector<8x64xf32>
    %98 = arith.truncf %97 : vector<8x64xf32> to vector<8x64xbf16>
    %cst_24 = arith.constant dense<0.000000e+00> : vector<8x128xf32>
    %99 = tpu.matmul %98, %13, %cst_24 {dimension_numbers = #tpu.dot_dimension_numbers<[1], [0], [0], [1], [0, 0, 1, 1], [], []>} : vector<8x64xbf16>, vector<64x128xbf16>, vector<8x128xf32> -> vector<8x128xf32>
    %100 = arith.addf %99, %16 : vector<8x128xf32>
    %101 = math.tanh %100 : vector<8x128xf32>
    %102 = arith.mulf %101, %8 : vector<8x128xf32>
    %103 = arith.addf %102, %11 : vector<8x128xf32>
    %104 = vector.extract_strided_slice %103 {offsets = [0, 0], sizes = [8, 32], strides = [1, 1]} : vector<8x128xf32> to vector<8x32xf32>
    %105 = vector.extract_strided_slice %103 {offsets = [0, 32], sizes = [8, 32], strides = [1, 1]} : vector<8x128xf32> to vector<8x32xf32>
    %106 = vector.extract_strided_slice %103 {offsets = [0, 64], sizes = [8, 32], strides = [1, 1]} : vector<8x128xf32> to vector<8x32xf32>
    %107 = vector.extract_strided_slice %103 {offsets = [0, 96], sizes = [8, 32], strides = [1, 1]} : vector<8x128xf32> to vector<8x32xf32>
    %108 = arith.mulf %105, %77 : vector<8x32xf32>
    %109 = arith.mulf %104, %106 : vector<8x32xf32>
    %110 = arith.addf %108, %109 : vector<8x32xf32>
    %111 = math.tanh %110 : vector<8x32xf32>
    %112 = arith.mulf %107, %111 : vector<8x32xf32>
    %113 = vector.extract_strided_slice %25 {offsets = [3, 0, 0], sizes = [1, 8, 128], strides = [1, 1, 1]} : vector<8x8x128xf32> to vector<1x8x128xf32>
    %114 = vector.shape_cast %113 : vector<1x8x128xf32> to vector<8x128xf32>
    %115 = arith.truncf %96 : vector<8x32xf32> to vector<8x32xbf16>
    %cst_25 = arith.constant dense<0.000000e+00> : vector<8x128xf32>
    %116 = tpu.matmul %115, %12, %cst_25 {dimension_numbers = #tpu.dot_dimension_numbers<[1], [0], [0], [1], [0, 0, 1, 1], [], []>} : vector<8x32xbf16>, vector<32x128xbf16>, vector<8x128xf32> -> vector<8x128xf32>
    %117 = arith.addf %114, %116 : vector<8x128xf32>
    %118 = math.tanh %117 : vector<8x128xf32>
    %119 = arith.mulf %118, %8 : vector<8x128xf32>
    %120 = arith.addf %119, %11 : vector<8x128xf32>
    %121 = vector.extract_strided_slice %120 {offsets = [0, 0], sizes = [8, 32], strides = [1, 1]} : vector<8x128xf32> to vector<8x32xf32>
    %122 = vector.extract_strided_slice %120 {offsets = [0, 32], sizes = [8, 32], strides = [1, 1]} : vector<8x128xf32> to vector<8x32xf32>
    %123 = vector.extract_strided_slice %120 {offsets = [0, 64], sizes = [8, 32], strides = [1, 1]} : vector<8x128xf32> to vector<8x32xf32>
    %124 = vector.extract_strided_slice %120 {offsets = [0, 96], sizes = [8, 32], strides = [1, 1]} : vector<8x128xf32> to vector<8x32xf32>
    %125 = arith.mulf %122, %94 : vector<8x32xf32>
    %126 = arith.mulf %121, %123 : vector<8x32xf32>
    %127 = arith.addf %125, %126 : vector<8x32xf32>
    %128 = math.tanh %127 : vector<8x32xf32>
    %129 = arith.mulf %124, %128 : vector<8x32xf32>
    %130 = tpu.concatenate %96, %112 in 1 : vector<8x32xf32>, vector<8x32xf32> -> vector<8x64xf32>
    %131 = arith.truncf %130 : vector<8x64xf32> to vector<8x64xbf16>
    %cst_26 = arith.constant dense<0.000000e+00> : vector<8x128xf32>
    %132 = tpu.matmul %131, %13, %cst_26 {dimension_numbers = #tpu.dot_dimension_numbers<[1], [0], [0], [1], [0, 0, 1, 1], [], []>} : vector<8x64xbf16>, vector<64x128xbf16>, vector<8x128xf32> -> vector<8x128xf32>
    %133 = arith.addf %132, %16 : vector<8x128xf32>
    %134 = math.tanh %133 : vector<8x128xf32>
    %135 = arith.mulf %134, %8 : vector<8x128xf32>
    %136 = arith.addf %135, %11 : vector<8x128xf32>
    %137 = vector.extract_strided_slice %136 {offsets = [0, 0], sizes = [8, 32], strides = [1, 1]} : vector<8x128xf32> to vector<8x32xf32>
    %138 = vector.extract_strided_slice %136 {offsets = [0, 32], sizes = [8, 32], strides = [1, 1]} : vector<8x128xf32> to vector<8x32xf32>
    %139 = vector.extract_strided_slice %136 {offsets = [0, 64], sizes = [8, 32], strides = [1, 1]} : vector<8x128xf32> to vector<8x32xf32>
    %140 = vector.extract_strided_slice %136 {offsets = [0, 96], sizes = [8, 32], strides = [1, 1]} : vector<8x128xf32> to vector<8x32xf32>
    %141 = arith.mulf %138, %110 : vector<8x32xf32>
    %142 = arith.mulf %137, %139 : vector<8x32xf32>
    %143 = arith.addf %141, %142 : vector<8x32xf32>
    %144 = math.tanh %143 : vector<8x32xf32>
    %145 = arith.mulf %140, %144 : vector<8x32xf32>
    %146 = vector.extract_strided_slice %25 {offsets = [4, 0, 0], sizes = [1, 8, 128], strides = [1, 1, 1]} : vector<8x8x128xf32> to vector<1x8x128xf32>
    %147 = vector.shape_cast %146 : vector<1x8x128xf32> to vector<8x128xf32>
    %148 = arith.truncf %129 : vector<8x32xf32> to vector<8x32xbf16>
    %cst_27 = arith.constant dense<0.000000e+00> : vector<8x128xf32>
    %149 = tpu.matmul %148, %12, %cst_27 {dimension_numbers = #tpu.dot_dimension_numbers<[1], [0], [0], [1], [0, 0, 1, 1], [], []>} : vector<8x32xbf16>, vector<32x128xbf16>, vector<8x128xf32> -> vector<8x128xf32>
    %150 = arith.addf %147, %149 : vector<8x128xf32>
    %151 = math.tanh %150 : vector<8x128xf32>
    %152 = arith.mulf %151, %8 : vector<8x128xf32>
    %153 = arith.addf %152, %11 : vector<8x128xf32>
    %154 = vector.extract_strided_slice %153 {offsets = [0, 0], sizes = [8, 32], strides = [1, 1]} : vector<8x128xf32> to vector<8x32xf32>
    %155 = vector.extract_strided_slice %153 {offsets = [0, 32], sizes = [8, 32], strides = [1, 1]} : vector<8x128xf32> to vector<8x32xf32>
    %156 = vector.extract_strided_slice %153 {offsets = [0, 64], sizes = [8, 32], strides = [1, 1]} : vector<8x128xf32> to vector<8x32xf32>
    %157 = vector.extract_strided_slice %153 {offsets = [0, 96], sizes = [8, 32], strides = [1, 1]} : vector<8x128xf32> to vector<8x32xf32>
    %158 = arith.mulf %155, %127 : vector<8x32xf32>
    %159 = arith.mulf %154, %156 : vector<8x32xf32>
    %160 = arith.addf %158, %159 : vector<8x32xf32>
    %161 = math.tanh %160 : vector<8x32xf32>
    %162 = arith.mulf %157, %161 : vector<8x32xf32>
    %163 = tpu.concatenate %129, %145 in 1 : vector<8x32xf32>, vector<8x32xf32> -> vector<8x64xf32>
    %164 = arith.truncf %163 : vector<8x64xf32> to vector<8x64xbf16>
    %cst_28 = arith.constant dense<0.000000e+00> : vector<8x128xf32>
    %165 = tpu.matmul %164, %13, %cst_28 {dimension_numbers = #tpu.dot_dimension_numbers<[1], [0], [0], [1], [0, 0, 1, 1], [], []>} : vector<8x64xbf16>, vector<64x128xbf16>, vector<8x128xf32> -> vector<8x128xf32>
    %166 = arith.addf %165, %16 : vector<8x128xf32>
    %167 = math.tanh %166 : vector<8x128xf32>
    %168 = arith.mulf %167, %8 : vector<8x128xf32>
    %169 = arith.addf %168, %11 : vector<8x128xf32>
    %170 = vector.extract_strided_slice %169 {offsets = [0, 0], sizes = [8, 32], strides = [1, 1]} : vector<8x128xf32> to vector<8x32xf32>
    %171 = vector.extract_strided_slice %169 {offsets = [0, 32], sizes = [8, 32], strides = [1, 1]} : vector<8x128xf32> to vector<8x32xf32>
    %172 = vector.extract_strided_slice %169 {offsets = [0, 64], sizes = [8, 32], strides = [1, 1]} : vector<8x128xf32> to vector<8x32xf32>
    %173 = vector.extract_strided_slice %169 {offsets = [0, 96], sizes = [8, 32], strides = [1, 1]} : vector<8x128xf32> to vector<8x32xf32>
    %174 = arith.mulf %171, %143 : vector<8x32xf32>
    %175 = arith.mulf %170, %172 : vector<8x32xf32>
    %176 = arith.addf %174, %175 : vector<8x32xf32>
    %177 = math.tanh %176 : vector<8x32xf32>
    %178 = arith.mulf %173, %177 : vector<8x32xf32>
    %179 = vector.extract_strided_slice %25 {offsets = [5, 0, 0], sizes = [1, 8, 128], strides = [1, 1, 1]} : vector<8x8x128xf32> to vector<1x8x128xf32>
    %180 = vector.shape_cast %179 : vector<1x8x128xf32> to vector<8x128xf32>
    %181 = arith.truncf %162 : vector<8x32xf32> to vector<8x32xbf16>
    %cst_29 = arith.constant dense<0.000000e+00> : vector<8x128xf32>
    %182 = tpu.matmul %181, %12, %cst_29 {dimension_numbers = #tpu.dot_dimension_numbers<[1], [0], [0], [1], [0, 0, 1, 1], [], []>} : vector<8x32xbf16>, vector<32x128xbf16>, vector<8x128xf32> -> vector<8x128xf32>
    %183 = arith.addf %180, %182 : vector<8x128xf32>
    %184 = math.tanh %183 : vector<8x128xf32>
    %185 = arith.mulf %184, %8 : vector<8x128xf32>
    %186 = arith.addf %185, %11 : vector<8x128xf32>
    %187 = vector.extract_strided_slice %186 {offsets = [0, 0], sizes = [8, 32], strides = [1, 1]} : vector<8x128xf32> to vector<8x32xf32>
    %188 = vector.extract_strided_slice %186 {offsets = [0, 32], sizes = [8, 32], strides = [1, 1]} : vector<8x128xf32> to vector<8x32xf32>
    %189 = vector.extract_strided_slice %186 {offsets = [0, 64], sizes = [8, 32], strides = [1, 1]} : vector<8x128xf32> to vector<8x32xf32>
    %190 = vector.extract_strided_slice %186 {offsets = [0, 96], sizes = [8, 32], strides = [1, 1]} : vector<8x128xf32> to vector<8x32xf32>
    %191 = arith.mulf %188, %160 : vector<8x32xf32>
    %192 = arith.mulf %187, %189 : vector<8x32xf32>
    %193 = arith.addf %191, %192 : vector<8x32xf32>
    %194 = math.tanh %193 : vector<8x32xf32>
    %195 = arith.mulf %190, %194 : vector<8x32xf32>
    %196 = tpu.concatenate %162, %178 in 1 : vector<8x32xf32>, vector<8x32xf32> -> vector<8x64xf32>
    %197 = arith.truncf %196 : vector<8x64xf32> to vector<8x64xbf16>
    %cst_30 = arith.constant dense<0.000000e+00> : vector<8x128xf32>
    %198 = tpu.matmul %197, %13, %cst_30 {dimension_numbers = #tpu.dot_dimension_numbers<[1], [0], [0], [1], [0, 0, 1, 1], [], []>} : vector<8x64xbf16>, vector<64x128xbf16>, vector<8x128xf32> -> vector<8x128xf32>
    %199 = arith.addf %198, %16 : vector<8x128xf32>
    %200 = math.tanh %199 : vector<8x128xf32>
    %201 = arith.mulf %200, %8 : vector<8x128xf32>
    %202 = arith.addf %201, %11 : vector<8x128xf32>
    %203 = vector.extract_strided_slice %202 {offsets = [0, 0], sizes = [8, 32], strides = [1, 1]} : vector<8x128xf32> to vector<8x32xf32>
    %204 = vector.extract_strided_slice %202 {offsets = [0, 32], sizes = [8, 32], strides = [1, 1]} : vector<8x128xf32> to vector<8x32xf32>
    %205 = vector.extract_strided_slice %202 {offsets = [0, 64], sizes = [8, 32], strides = [1, 1]} : vector<8x128xf32> to vector<8x32xf32>
    %206 = vector.extract_strided_slice %202 {offsets = [0, 96], sizes = [8, 32], strides = [1, 1]} : vector<8x128xf32> to vector<8x32xf32>
    %207 = arith.mulf %204, %176 : vector<8x32xf32>
    %208 = arith.mulf %203, %205 : vector<8x32xf32>
    %209 = arith.addf %207, %208 : vector<8x32xf32>
    %210 = math.tanh %209 : vector<8x32xf32>
    %211 = arith.mulf %206, %210 : vector<8x32xf32>
    %212 = vector.extract_strided_slice %25 {offsets = [6, 0, 0], sizes = [1, 8, 128], strides = [1, 1, 1]} : vector<8x8x128xf32> to vector<1x8x128xf32>
    %213 = vector.shape_cast %212 : vector<1x8x128xf32> to vector<8x128xf32>
    %214 = arith.truncf %195 : vector<8x32xf32> to vector<8x32xbf16>
    %cst_31 = arith.constant dense<0.000000e+00> : vector<8x128xf32>
    %215 = tpu.matmul %214, %12, %cst_31 {dimension_numbers = #tpu.dot_dimension_numbers<[1], [0], [0], [1], [0, 0, 1, 1], [], []>} : vector<8x32xbf16>, vector<32x128xbf16>, vector<8x128xf32> -> vector<8x128xf32>
    %216 = arith.addf %213, %215 : vector<8x128xf32>
    %217 = math.tanh %216 : vector<8x128xf32>
    %218 = arith.mulf %217, %8 : vector<8x128xf32>
    %219 = arith.addf %218, %11 : vector<8x128xf32>
    %220 = vector.extract_strided_slice %219 {offsets = [0, 0], sizes = [8, 32], strides = [1, 1]} : vector<8x128xf32> to vector<8x32xf32>
    %221 = vector.extract_strided_slice %219 {offsets = [0, 32], sizes = [8, 32], strides = [1, 1]} : vector<8x128xf32> to vector<8x32xf32>
    %222 = vector.extract_strided_slice %219 {offsets = [0, 64], sizes = [8, 32], strides = [1, 1]} : vector<8x128xf32> to vector<8x32xf32>
    %223 = vector.extract_strided_slice %219 {offsets = [0, 96], sizes = [8, 32], strides = [1, 1]} : vector<8x128xf32> to vector<8x32xf32>
    %224 = arith.mulf %221, %193 : vector<8x32xf32>
    %225 = arith.mulf %220, %222 : vector<8x32xf32>
    %226 = arith.addf %224, %225 : vector<8x32xf32>
    %227 = math.tanh %226 : vector<8x32xf32>
    %228 = arith.mulf %223, %227 : vector<8x32xf32>
    %229 = tpu.concatenate %195, %211 in 1 : vector<8x32xf32>, vector<8x32xf32> -> vector<8x64xf32>
    %230 = arith.truncf %229 : vector<8x64xf32> to vector<8x64xbf16>
    %cst_32 = arith.constant dense<0.000000e+00> : vector<8x128xf32>
    %231 = tpu.matmul %230, %13, %cst_32 {dimension_numbers = #tpu.dot_dimension_numbers<[1], [0], [0], [1], [0, 0, 1, 1], [], []>} : vector<8x64xbf16>, vector<64x128xbf16>, vector<8x128xf32> -> vector<8x128xf32>
    %232 = arith.addf %231, %16 : vector<8x128xf32>
    %233 = math.tanh %232 : vector<8x128xf32>
    %234 = arith.mulf %233, %8 : vector<8x128xf32>
    %235 = arith.addf %234, %11 : vector<8x128xf32>
    %236 = vector.extract_strided_slice %235 {offsets = [0, 0], sizes = [8, 32], strides = [1, 1]} : vector<8x128xf32> to vector<8x32xf32>
    %237 = vector.extract_strided_slice %235 {offsets = [0, 32], sizes = [8, 32], strides = [1, 1]} : vector<8x128xf32> to vector<8x32xf32>
    %238 = vector.extract_strided_slice %235 {offsets = [0, 64], sizes = [8, 32], strides = [1, 1]} : vector<8x128xf32> to vector<8x32xf32>
    %239 = vector.extract_strided_slice %235 {offsets = [0, 96], sizes = [8, 32], strides = [1, 1]} : vector<8x128xf32> to vector<8x32xf32>
    %240 = arith.mulf %237, %209 : vector<8x32xf32>
    %241 = arith.mulf %236, %238 : vector<8x32xf32>
    %242 = arith.addf %240, %241 : vector<8x32xf32>
    %243 = math.tanh %242 : vector<8x32xf32>
    %244 = arith.mulf %239, %243 : vector<8x32xf32>
    %245 = vector.extract_strided_slice %25 {offsets = [7, 0, 0], sizes = [1, 8, 128], strides = [1, 1, 1]} : vector<8x8x128xf32> to vector<1x8x128xf32>
    %246 = vector.shape_cast %245 : vector<1x8x128xf32> to vector<8x128xf32>
    %247 = arith.truncf %228 : vector<8x32xf32> to vector<8x32xbf16>
    %cst_33 = arith.constant dense<0.000000e+00> : vector<8x128xf32>
    %248 = tpu.matmul %247, %12, %cst_33 {dimension_numbers = #tpu.dot_dimension_numbers<[1], [0], [0], [1], [0, 0, 1, 1], [], []>} : vector<8x32xbf16>, vector<32x128xbf16>, vector<8x128xf32> -> vector<8x128xf32>
    %249 = arith.addf %246, %248 : vector<8x128xf32>
    %250 = math.tanh %249 : vector<8x128xf32>
    %251 = arith.mulf %250, %8 : vector<8x128xf32>
    %252 = arith.addf %251, %11 : vector<8x128xf32>
    %253 = vector.extract_strided_slice %252 {offsets = [0, 0], sizes = [8, 32], strides = [1, 1]} : vector<8x128xf32> to vector<8x32xf32>
    %254 = vector.extract_strided_slice %252 {offsets = [0, 32], sizes = [8, 32], strides = [1, 1]} : vector<8x128xf32> to vector<8x32xf32>
    %255 = vector.extract_strided_slice %252 {offsets = [0, 64], sizes = [8, 32], strides = [1, 1]} : vector<8x128xf32> to vector<8x32xf32>
    %256 = vector.extract_strided_slice %252 {offsets = [0, 96], sizes = [8, 32], strides = [1, 1]} : vector<8x128xf32> to vector<8x32xf32>
    %257 = arith.mulf %254, %226 : vector<8x32xf32>
    %258 = arith.mulf %253, %255 : vector<8x32xf32>
    %259 = arith.addf %257, %258 : vector<8x32xf32>
    %260 = math.tanh %259 : vector<8x32xf32>
    %261 = arith.mulf %256, %260 : vector<8x32xf32>
    %262 = tpu.concatenate %228, %244 in 1 : vector<8x32xf32>, vector<8x32xf32> -> vector<8x64xf32>
    %263 = arith.truncf %262 : vector<8x64xf32> to vector<8x64xbf16>
    %cst_34 = arith.constant dense<0.000000e+00> : vector<8x128xf32>
    %264 = tpu.matmul %263, %13, %cst_34 {dimension_numbers = #tpu.dot_dimension_numbers<[1], [0], [0], [1], [0, 0, 1, 1], [], []>} : vector<8x64xbf16>, vector<64x128xbf16>, vector<8x128xf32> -> vector<8x128xf32>
    %265 = arith.addf %264, %16 : vector<8x128xf32>
    %266 = math.tanh %265 : vector<8x128xf32>
    %267 = arith.mulf %266, %8 : vector<8x128xf32>
    %268 = arith.addf %267, %11 : vector<8x128xf32>
    %269 = vector.extract_strided_slice %268 {offsets = [0, 0], sizes = [8, 32], strides = [1, 1]} : vector<8x128xf32> to vector<8x32xf32>
    %270 = vector.extract_strided_slice %268 {offsets = [0, 32], sizes = [8, 32], strides = [1, 1]} : vector<8x128xf32> to vector<8x32xf32>
    %271 = vector.extract_strided_slice %268 {offsets = [0, 64], sizes = [8, 32], strides = [1, 1]} : vector<8x128xf32> to vector<8x32xf32>
    %272 = vector.extract_strided_slice %268 {offsets = [0, 96], sizes = [8, 32], strides = [1, 1]} : vector<8x128xf32> to vector<8x32xf32>
    %273 = arith.mulf %270, %242 : vector<8x32xf32>
    %274 = arith.mulf %269, %271 : vector<8x32xf32>
    %275 = arith.addf %273, %274 : vector<8x32xf32>
    %276 = math.tanh %275 : vector<8x32xf32>
    %277 = arith.mulf %272, %276 : vector<8x32xf32>
    %278 = tpu.concatenate %261, %277 in 1 : vector<8x32xf32>, vector<8x32xf32> -> vector<8x64xf32>
    %279 = arith.truncf %278 : vector<8x64xf32> to vector<8x64xbf16>
    %cst_35 = arith.constant dense<0.000000e+00> : vector<8x128xf32>
    %280 = tpu.matmul %279, %13, %cst_35 {dimension_numbers = #tpu.dot_dimension_numbers<[1], [0], [0], [1], [0, 0, 1, 1], [], []>} : vector<8x64xbf16>, vector<64x128xbf16>, vector<8x128xf32> -> vector<8x128xf32>
    %281 = arith.addf %280, %16 : vector<8x128xf32>
    %282 = math.tanh %281 : vector<8x128xf32>
    %283 = arith.mulf %282, %8 : vector<8x128xf32>
    %284 = arith.addf %283, %11 : vector<8x128xf32>
    %285 = vector.extract_strided_slice %284 {offsets = [0, 0], sizes = [8, 32], strides = [1, 1]} : vector<8x128xf32> to vector<8x32xf32>
    %286 = vector.extract_strided_slice %284 {offsets = [0, 32], sizes = [8, 32], strides = [1, 1]} : vector<8x128xf32> to vector<8x32xf32>
    %287 = vector.extract_strided_slice %284 {offsets = [0, 64], sizes = [8, 32], strides = [1, 1]} : vector<8x128xf32> to vector<8x32xf32>
    %288 = vector.extract_strided_slice %284 {offsets = [0, 96], sizes = [8, 32], strides = [1, 1]} : vector<8x128xf32> to vector<8x32xf32>
    %289 = arith.mulf %286, %275 : vector<8x32xf32>
    %290 = arith.mulf %285, %287 : vector<8x32xf32>
    %291 = arith.addf %289, %290 : vector<8x32xf32>
    %292 = math.tanh %291 : vector<8x32xf32>
    %293 = arith.mulf %288, %292 : vector<8x32xf32>
    %294 = vector.shape_cast %79 : vector<8x32xf32> to vector<1x8x32xf32>
    %295 = vector.shape_cast %112 : vector<8x32xf32> to vector<1x8x32xf32>
    %296 = vector.shape_cast %145 : vector<8x32xf32> to vector<1x8x32xf32>
    %297 = vector.shape_cast %178 : vector<8x32xf32> to vector<1x8x32xf32>
    %298 = vector.shape_cast %211 : vector<8x32xf32> to vector<1x8x32xf32>
    %299 = vector.shape_cast %244 : vector<8x32xf32> to vector<1x8x32xf32>
    %300 = vector.shape_cast %277 : vector<8x32xf32> to vector<1x8x32xf32>
    %301 = vector.shape_cast %293 : vector<8x32xf32> to vector<1x8x32xf32>
    %302 = tpu.concatenate %294, %295, %296, %297, %298, %299, %300, %301 in 0 : vector<1x8x32xf32>, vector<1x8x32xf32>, vector<1x8x32xf32>, vector<1x8x32xf32>, vector<1x8x32xf32>, vector<1x8x32xf32>, vector<1x8x32xf32>, vector<1x8x32xf32> -> vector<8x8x32xf32>
    %303 = vector.shape_cast %302 : vector<8x8x32xf32> to vector<64x32xf32>
    %304 = arith.truncf %303 : vector<64x32xf32> to vector<64x32xbf16>
    %c0_36 = arith.constant 0 : index
    %c0_37 = arith.constant 0 : index
    %305 = vector.load %arg6[%c0_36, %c0_37] : memref<32x32xbf16, #tpu.memory_space<vmem>>, vector<32x32xbf16>
    %cst_38 = arith.constant dense<0.000000e+00> : vector<64x32xf32>
    %306 = tpu.matmul %304, %305, %cst_38 {dimension_numbers = #tpu.dot_dimension_numbers<[1], [0], [0], [1], [0, 0, 1, 1], [], []>} : vector<64x32xbf16>, vector<32x32xbf16>, vector<64x32xf32> -> vector<64x32xf32>
    %c0_39 = arith.constant 0 : index
    %c0_40 = arith.constant 0 : index
    %307 = vector.load %arg7[%c0_39, %c0_40] : memref<1x32xf32, #tpu.memory_space<vmem>>, vector<1x32xf32>
    %308 = vector.broadcast %307 : vector<1x32xf32> to vector<64x32xf32>
    %309 = arith.addf %306, %308 : vector<64x32xf32>
    %310 = math.tanh %309 : vector<64x32xf32>
    %311 = arith.truncf %310 : vector<64x32xf32> to vector<64x32xbf16>
    %c0_41 = arith.constant 0 : index
    %c0_42 = arith.constant 0 : index
    %312 = vector.load %arg8[%c0_41, %c0_42] : memref<32x4xbf16, #tpu.memory_space<vmem>>, vector<32x4xbf16>
    %cst_43 = arith.constant dense<0.000000e+00> : vector<64x4xf32>
    %313 = tpu.matmul %311, %312, %cst_43 {dimension_numbers = #tpu.dot_dimension_numbers<[1], [0], [0], [1], [0, 0, 1, 1], [], []>} : vector<64x32xbf16>, vector<32x4xbf16>, vector<64x4xf32> -> vector<64x4xf32>
    %c0_44 = arith.constant 0 : index
    %c0_45 = arith.constant 0 : index
    %314 = vector.load %arg9[%c0_44, %c0_45] : memref<1x4xf32, #tpu.memory_space<vmem>>, vector<1x4xf32>
    %315 = vector.broadcast %314 : vector<1x4xf32> to vector<64x4xf32>
    %316 = arith.addf %313, %315 : vector<64x4xf32>
    %317 = vector.shape_cast %316 : vector<64x4xf32> to vector<8x8x4xf32>
    %c0_46 = arith.constant 0 : index
    %c0_47 = arith.constant 0 : index
    %c0_48 = arith.constant 0 : index
    %318 = vector.load %arg10[%c0_46, %c0_47, %c0_48] : memref<8x8x4xf32, #tpu.memory_space<vmem>>, vector<8x8x4xf32>
    tpu.vector_store %arg10[%c0_46, %c0_47, %c0_48], %317 {strides = array<i32>} : memref<8x8x4xf32, #tpu.memory_space<vmem>>, vector<8x8x4xf32>,
    return
  }
}

</mosaic_0001>

<bundles_post_ra>
// kernel: tpu_custom_call.1
= control target key start
LH: loop header
LB: loop body
LE: loop exit
PB: predicated region body
PF: predicated region fallthrough
CT: control target
= control target key end

     0   :  { %15 = vsyncpa [#allocation3], 0  ;;  %s2723_s0 = inlined_call_operand.hbm [shape: f32[8,8,16], index: 0, kind: input, shape index: {}]   ;;  %s2724_s1 = inlined_call_operand.hbm [shape: bf16[16,128], index: 1, kind: input, shape index: {}]   ;;  %s2725_s2 = inlined_call_operand.hbm [shape: bf16[32,128], index: 2, kind: input, shape index: {}]   ;;  %s2726_s3 = inlined_call_operand.vmem [shape: f32[1,128], index: 3, kind: input, shape index: {}]   ;;  %s2727_s4 = inlined_call_operand.vmem [shape: bf16[64,128], index: 4, kind: input, shape index: {}]   ;;  %s2728_s5 = inlined_call_operand.vmem [shape: f32[1,128], index: 5, kind: input, shape index: {}]   ;;  %s2729_s6 = inlined_call_operand.hbm [shape: bf16[32,32], index: 6, kind: input, shape index: {}]   ;;  %s2730_s7 = inlined_call_operand.vmem [shape: f32[1,32], index: 7, kind: input, shape index: {}]   ;;  %s2731_s8 = inlined_call_operand.vmem [shape: bf16[32,4], index: 8, kind: input, shape index: {}]   ;;  %s2732_s9 = inlined_call_operand.vmem [shape: f32[1,4], index: 9, kind: input, shape index: {}]   ;;  %s2733_s10 = inlined_call_operand.vmem [shape: f32[8,8,4], index: 10, kind: output, shape index: {}]  }
   0x1   :  { %16 = vsyncpa [#allocation5], 0 }
   0x2   :  { %17 = vsyncpa [#allocation8], 0  ;;  %s2139_s13 = smov [#allocation4]   ;;  %s2045_s17 = scalar_lea.hbm %s2724_s1, 128 }
   0x3   :  { %s35_s14 = sshll.u32 %s2139_s13, 4  ;;  %p2046_p0 = scmp.ne.s32.totalorder %s2724_s1, %s2045_s17  ;;  %s36_s14 = int_to_ptr.vmem [resolvable:$true] %s35_s14 }
   0x4   :  { %p2049_p1 = scmp.lt.u32.totalorder %s2045_s17, %s2724_s1 }
   0x6   :  { %p2051_p2 = pnand %p2049_p1, %p2046_p0 }
   0x8   :  { %2054 = shalt.err (!%p2051_p2)
}
   0x9   :  { %s2055_s22 = scalar_lea.vmem %s36_s14, 128  ;;  %p2060_p4 = scmp.lt.s32.totalorder %s36_s14, %s36_s14 }
   0xa   :  { %p2056_p3 = scmp.ne.s32.totalorder %s36_s14, %s2055_s22  ;;  %p2061_p5 = scmp.lt.s32.totalorder %s2055_s22, %s2055_s22 }
   0xc   :  { %p2062_p6 = por %p2061_p5, %p2060_p4 }
   0xe   :  { %p2063_p7 = pnand %p2062_p6, %p2056_p3 }
  0x10   :  { %2066 = shalt.err (!%p2063_p7)
}
  0x11   :  { %s2140_s23 = smov 64   ;;  %s2141_s24 = smov 4  }
  0x12   :  { %41 = dma.hbm_to_vmem [thread:$0]  %s2724_s1, 128, %s36_s14, [#allocation5], %s2140_s23, %s2140_s23, %s2141_s24  }
  0x13   :  { %s2142_s27 = smov [#allocation2]   ;;  %s2067_s11 = scalar_lea.hbm %s2723_s0, 1024 }
  0x14   :  { %s23_s28 = sshll.u32 %s2142_s27, 4  ;;  %p2068_p8 = scmp.ne.s32.totalorder %s2723_s0, %s2067_s11  ;;  %s24_s28 = int_to_ptr.vmem [resolvable:$true] %s23_s28 }
  0x15   :  { %p2071_p9 = scmp.lt.u32.totalorder %s2067_s11, %s2723_s0 }
  0x17   :  { %p2073_p10 = pnand %p2071_p9, %p2068_p8 }
  0x19   :  { %2076 = shalt.err (!%p2073_p10)
}
  0x1a   :  { %s2077_s17 = scalar_lea.vmem %s24_s28, 1024  ;;  %p2082_p12 = scmp.lt.s32.totalorder %s24_s28, %s24_s28 }
  0x1b   :  { %p2078_p11 = scmp.ne.s32.totalorder %s24_s28, %s2077_s17  ;;  %p2083_p13 = scmp.lt.s32.totalorder %s2077_s17, %s2077_s17 }
  0x1d   :  { %p2084_p0 = por %p2083_p13, %p2082_p12 }
  0x1f   :  { %p2085_p1 = pnand %p2084_p0, %p2078_p11 }
  0x21   :  { %2088 = shalt.err (!%p2085_p1)
}
  0x22   :  { %s2143_s1 = smov 128   ;;  %s2144_s14 = smov 8  }
  0x23   :  { %29 = dma.hbm_to_vmem [thread:$0]  %s2723_s0, 1024, %s24_s28, [#allocation3], %s2143_s1, %s2143_s1, %s2144_s14  }
  0x24   :  { %s2145_s20 = smov [#allocation6]   ;;  %s2146_s22 = smov [#allocation7]  }
  0x25   :  { %s47_s21 = sshll.u32 %s2145_s20, 4  ;;  %s65_s25 = sshll.u32 %s2146_s22, 4  ;;  %s48_s21 = int_to_ptr.vmem [resolvable:$true] %s47_s21  ;;  %s2234_s25 = int_to_ptr.vmem [resolvable:$true] %s65_s25 }
  0x26   :  { %s2089_s29 = scalar_lea.hbm %s2725_s2, 256 }
  0x27   :  { %p2090_p2 = scmp.ne.s32.totalorder %s2725_s2, %s2089_s29  ;;  %p2093_p3 = scmp.lt.u32.totalorder %s2089_s29, %s2725_s2 }
  0x29   :  { %p2095_p4 = pnand %p2093_p3, %p2090_p2 }
  0x2b   :  { %2098 = shalt.err (!%p2095_p4)
}
  0x2c   :  { %s2099_s0 = scalar_lea.vmem %s48_s21, 256  ;;  %p2104_p6 = scmp.lt.s32.totalorder %s48_s21, %s48_s21 }
  0x2d   :  { %p2100_p5 = scmp.ne.s32.totalorder %s48_s21, %s2099_s0  ;;  %p2105_p7 = scmp.lt.s32.totalorder %s2099_s0, %s2099_s0 }
  0x2f   :  { %p2106_p8 = por %p2105_p7, %p2104_p6 }
  0x31   :  { %p2107_p9 = pnand %p2106_p8, %p2100_p5 }
  0x33   :  { %2110 = shalt.err (!%p2107_p9)
}
  0x34   :  { %53 = dma.hbm_to_vmem [thread:$0]  %s2725_s2, 256, %s48_s21, [#allocation5], %s2140_s23, %s2140_s23, %s2141_s24  }
  0x35   :  { %s2111_s1 = scalar_lea.hbm %s2729_s6, 256 }
  0x36   :  { %p2112_p10 = scmp.ne.s32.totalorder %s2729_s6, %s2111_s1  ;;  %p2115_p11 = scmp.lt.u32.totalorder %s2111_s1, %s2729_s6 }
  0x38   :  { %p2117_p12 = pnand %p2115_p11, %p2112_p10 }
  0x3a   :  { %2120 = shalt.err (!%p2117_p12)
}
  0x3b   :  { %s2121_s22 = scalar_lea.vmem %s2234_s25, 256  ;;  %p2126_p0 = scmp.lt.s32.totalorder %s2234_s25, %s2234_s25 }
  0x3c   :  { %p2122_p13 = scmp.ne.s32.totalorder %s2234_s25, %s2121_s22  ;;  %p2127_p1 = scmp.lt.s32.totalorder %s2121_s22, %s2121_s22 }
  0x3e   :  { %p2128_p2 = por %p2127_p1, %p2126_p0 }
  0x40   :  { %p2129_p3 = pnand %p2128_p2, %p2122_p13 }
  0x42   :  { %2132 = shalt.err (!%p2129_p3)
}
  0x43   :  { %71 = dma.hbm_to_vmem [thread:$0]  %s2729_s6, 256, %s2234_s25, [#allocation8], %s2140_s23, %s2140_s23, %s2141_s24  }
  0x44   :  { %2133 = dma.done.wait [#allocation3], 1024  }
  0x45   :  { %2134 = vsyncadd [#allocation3], 4294966272 }
  0x46   :  { %2135 = dma.done.wait [#allocation5], 384  }
  0x47   :  { %2136 = vsyncadd [#allocation5], 4294966912 }
  0x48   :  { %2137 = dma.done.wait [#allocation8], 256  }
  0x49   :  { %2138 = vsyncadd [#allocation8], 4294967040  ;;  %v2147_v0 = vmov 0.0   ;;  %vm2148_vm0 = vmmov 0   ;;  %v1954_v1 = vld [vmem:[#allocation4] sm:$0xff]   ;;  %v2274_v2 = vld [vmem:[#allocation6] sm:$0xff]   ;;  %v91_v14 = vlaneseq }
  0x4a   :  { %1757 = vmatprep.subr.bf16.mxu1 %v2147_v0  ;;  %1761 = vmatprep.mubr.msk.bf16.mxu1 %vm2148_vm0, %v2147_v0  ;;  %v117_v3 = vld [vmem:[#allocation2] sm:$0xff]  ;;  %v118_v4 = vld [vmem:[#allocation2 + $0x8] sm:$0xff]  ;;  %vm144_vm1 = vcmask 130048   ;;  %v119_v5 = vld [vmem:[#allocation2 + $0x10] sm:$0xff]  ;;  %v2149_v10 = vmov 0   ;;  %v2150_v24 = vmov 0.5  }
  0x4b   :  { %1747 = vmatprep.subr.bf16.mxu0 %v1954_v1  ;;  %1758 = vmatpush3.bf16.msra.mxu1 %v2274_v2  ;;  %v125_v6 = vpack.c.bf16 %v118_v4, %v117_v3  ;;  %v120_v7 = vld [vmem:[#allocation2 + $0x18] sm:$0xff]  ;;  %v2278_v9 = vld [vmem:[#allocation6 + $0x8] sm:$0xff]   ;;  %v2294_v11 = vld [vmem:[%s2726_s3] ss:$0 sm:$0xff]  ;;  %v92_v21 = vand.u32 127, %v91_v14  ;;  %s2151_s3 = smov 32  }
  0x4c   :  { %1748 = vmatpush3.bf16.msra.mxu0 %v1954_v1  ;;  %1759 = vmatprep.subr.bf16.mxu1 %v2147_v0  ;;  %v126_v8 = vpack.c.bf16 %v120_v7, %v119_v5  ;;  %v2317_v35 = vld [vmem:[%s2727_s4] sm:$0xff]   ;;  %v122_v37 = vld [vmem:[#allocation2 + $0x28] sm:$0xff]  ;;  %v123_v38 = vld [vmem:[#allocation2 + $0x30] sm:$0xff]  ;;  %vm234_vm5 = vcmask 261120   ;;  %vm397_vm6 = vcmask 523264   ;;  %vm1608_vm7 = vcmask 31744  }
  0x4d   :  { %1773 = vmatprep.subr.bf16.mxu0 %v2147_v0  ;;  %1749 = vmatprep.mubr.msk.bf16.mxu0 %vm144_vm1, %v125_v6  ;;  %vm93_vm2 = vcmp.ge.s32.totalorder %v92_v21, 64  ;;  %vm94_vm3 = vcmp.lt.s32.totalorder %v92_v21, 96  ;;  %v121_v36 = vld [vmem:[#allocation2 + $0x20] sm:$0xff]  ;;  %v124_v39 = vld [vmem:[#allocation2 + $0x38] sm:$0xff]  ;;  %v2323_v40 = vld [vmem:[%s2727_s4 + $0x8] sm:$0xff]  }
  0x4e   :  { %vm95_vm4 = vmand %vm93_vm2, %vm94_vm3  ;;  %v127_v41 = vpack.c.bf16 %v122_v37, %v121_v36  ;;  %v128_v42 = vpack.c.bf16 %v124_v39, %v123_v38  ;;  %v2332_v43 = vld [vmem:[%s2727_s4 + $0x10] sm:$0xff]   ;;  %v2343_v45 = vld [vmem:[%s2727_s4 + $0x18] sm:$0xff]  }
  0x4f   :  { %1750 = vmatmul.mubr.msk.bf16.vlgmr.msra.gmra.mrb[0].mxu0 %vm144_vm1, %v126_v8  ;;  %1760 = vmatpush3.bf16.msra.mxu1 %v2278_v9  ;;  %v2303_v25 = vsel %vm95_vm4, 1.0, %v2150_v24  ;;  %v2305_v27 = vsel %vm95_vm4, 0.0, %v2150_v24  ;;  %v2381_v58 = vld [vmem:[%s2728_s5] ss:$0 sm:$0xff] }
  0x50   :  { %1765 = vmatprep.subr.bf16.mxu1 %v2147_v0  ;;  %1774 = vmatpush3.bf16.msra.mxu0 %v2317_v35 }
  0x51   :  { %1775 = vmatprep.subr.bf16.mxu0 %v2147_v0  ;;  %1753 = vmatprep.mubr.msk.bf16.mxu0 %vm144_vm1, %v127_v41 }
  0x52   :  { %1762 = vmatmul.mubr.bf16.vlgmr.msra.gmra.mrb[0].mxu1 %v2149_v10 }
  0x53   :  { %1766 = vmatpush3.bf16.msra.mxu1 %v2274_v2  ;;  %1769 = vmatprep.mubr.msk.bf16.mxu1 %vm2148_vm0, %v2147_v0 }
  0x54   :  { %1767 = vmatprep.subr.bf16.mxu1 %v2147_v0  ;;  %1776 = vmatpush3.bf16.msra.mxu0 %v2323_v40 }
  0x55   :  { %1777 = vmatprep.subr.bf16.mxu0 %v2147_v0 }
  0x57   :  { %1768 = vmatpush3.bf16.msra.mxu1 %v2278_v9  ;;  %1754 = vmatmul.mubr.msk.bf16.gmra.mrb[4].mxu0 %vm144_vm1, %v128_v42 }
  0x58   :  { %1785 = vmatprep.subr.bf16.mxu1 %v2147_v0  ;;  %1781 = vmatprep.mubr.msk.bf16.mxu0 %vm2148_vm0, %v2147_v0 }
  0x59   :  { %1778 = vmatpush3.bf16.msra.mxu0 %v2332_v43 }
  0x5a   :  { %1779 = vmatprep.subr.bf16.mxu0 %v2147_v0 }
  0x5d   :  { %1780 = vmatpush3.bf16.msra.mxu0 %v2343_v45 }
  0x5e   :  { %1793 = vmatprep.subr.bf16.mxu0 %v2147_v0 }
 0x122   :  { %v2296_v12 = vpop.f32.mrb[0].mxu0 }
 0x123   :  { %v191_v13 = vpop.f32.mrb[1].mxu0 }
 0x124   :  { %v192_v15 = vadd.f32 %v2294_v11, %v191_v13  ;;  %v2299_v16 = vpop.f32.mrb[2].mxu0 }
 0x125   :  { %v2301_v17 = vpop.f32.mrb[3].mxu0  ;;  %v272_v18 = vpop.f32.mrb[0].mxu1 }
 0x126   :  { %v278_v19 = vadd.f32 %v272_v18, %v192_v15  ;;  %v1763_v20 = vpop.f32.mrb[1].mxu1  ;;  %v195_v57 = vadd.f32 %v2294_v11, %v2301_v17 }
 0x127   :  { %v275_v22 = vpop.f32.mrb[2].mxu1 }
 0x128   :  { %1965 = vtanh.f32 %v278_v19  ;;  %v1764_v23 = vpop.f32.mrb[3].mxu1 }
 0x12a   :  { %v2349_v49 = vpop.f32.mrb[4].mxu0 }
 0x12b   :  { %v2351_v50 = vpop.f32.mrb[5].mxu0 }
 0x12c   :  { %v2353_v51 = vpop.f32.mrb[6].mxu0 }
 0x12d   :  { %v2355_v52 = vpop.f32.mrb[7].mxu0 }
 0x132   :  { %v1966_v26 = vpop.eup %1965 }
 0x133   :  { %v280_v28 = vmul.f32 %v1966_v26, %v2303_v25 }
 0x135   :  { %v281_v29 = vadd.f32 %v280_v28, %v2305_v27 }
 0x137   :  { %284 = vrot.lane.b32.xlu0 %v281_v29, %s2140_s23  ;;  %v282_v32 = vmul.f32 0.0, %v281_v29 }
 0x1a9   :  { %v285_v30 = vpop.permute.xlu0 %284 }
 0x1aa   :  { %v287_v31 = vmul.f32 %v285_v30, %v281_v29 }
 0x1ac   :  { %289 = vrot.lane.b32.xlu0 %v287_v31, %s2151_s3 }
 0x21e   :  { %v290_v33 = vpop.permute.xlu0 %289 }
 0x21f   :  { %v2311_v34 = vadd.f32 %v290_v33, %v282_v32 }
 0x221   :  { %1967 = vtanh.f32 %v2311_v34 }
 0x22b   :  { %v1968_v44 = vpop.eup %1967 }
 0x22c   :  { %295 = vrot.lane.b32.xlu1 %v1968_v44, %s2140_s23  ;;  %v200_v44 = vadd.f32 %v2296_v12, %v2294_v11 }
 0x29e   :  { %v296_v46 = vpop.permute.xlu1 %295 }
 0x29f   :  { %v298_v47 = vmul.f32 %v296_v46, %v281_v29 }
 0x2a1   :  { %v299_v48 = vpack.c.bf16 %v298_v47, %v298_v47  ;;  %368 = vrot.lane.b32.xlu0 %v298_v47, %s2151_s3 }
 0x2a3   :  { %301 = vrot.lane.b32.xlu1 %v299_v48, %s2151_s3 }
 0x313   :  { %v369_v53 = vpop.permute.xlu0 %368 }
 0x314   :  { %v371_v54 = vsel %vm234_vm5, %v369_v53, 0.0 }
 0x315   :  { %v372_v55 = vpack.c.bf16 %v371_v54, %v371_v54  ;;  %v302_v56 = vpop.permute.xlu1 %301 }
 0x316   :  { %1770 = vmatmul.mubr.msk.bf16.vlgmr.msra.gmra.mrb[4].mxu1 %vm234_vm5, %v302_v56 }
 0x317   :  { %1782 = vmatmul.mubr.msk.bf16.vlgmr.msra.gmra.mrb[8].mxu0 %vm397_vm6, %v372_v55  ;;  %1786 = vmatpush3.bf16.msra.mxu1 %v2274_v2 }
 0x318   :  { %1794 = vmatpush3.bf16.msra.mxu0 %v2317_v35  ;;  %1787 = vmatprep.subr.bf16.mxu1 %v2147_v0 }
 0x319   :  { %1795 = vmatprep.subr.bf16.mxu0 %v2147_v0  ;;  %1789 = vmatprep.mubr.msk.bf16.mxu1 %vm2148_vm0, %v2147_v0 }
 0x31a   :  { %1801 = vmatprep.mubr.msk.bf16.mxu0 %vm2148_vm0, %v2147_v0 }
 0x31b   :  { %1788 = vmatpush3.bf16.msra.mxu1 %v2278_v9 }
 0x31c   :  { %1796 = vmatpush3.bf16.msra.mxu0 %v2323_v40  ;;  %1805 = vmatprep.subr.bf16.mxu1 %v2147_v0 }
 0x31d   :  { %1797 = vmatprep.subr.bf16.mxu0 %v2147_v0 }
 0x320   :  { %1798 = vmatpush3.bf16.msra.mxu0 %v2332_v43 }
 0x321   :  { %1799 = vmatprep.subr.bf16.mxu0 %v2147_v0 }
 0x324   :  { %1800 = vmatpush3.bf16.msra.mxu0 %v2343_v45 }
 0x325   :  { %1825 = vmatprep.subr.bf16.mxu0 %v2147_v0 }
 0x3e9   :  { %v340_v59 = vpop.f32.mrb[4].mxu1 }
 0x3ea   :  { %v346_v60 = vadd.f32 %v340_v59, %v195_v57  ;;  %v1771_v61 = vpop.f32.mrb[5].mxu1  ;;  %v435_v62 = vpop.f32.mrb[8].mxu0 }
 0x3eb   :  { %v436_v63 = vadd.f32 %v2381_v58, %v435_v62  ;;  %v343_v1 = vpop.f32.mrb[6].mxu1  ;;  %v1783_v3 = vpop.f32.mrb[9].mxu0 }
 0x3ec   :  { %1969 = vtanh.f32 %v346_v60  ;;  %v1772_v4 = vpop.f32.mrb[7].mxu1  ;;  %v438_v5 = vpop.f32.mrb[10].mxu0 }
 0x3ed   :  { %1971 = vtanh.f32 %v436_v63  ;;  %v1784_v6 = vpop.f32.mrb[11].mxu0 }
 0x3f6   :  { %v1970_v7 = vpop.eup %1969 }
 0x3f7   :  { %v1972_v8 = vpop.eup %1971  ;;  %v348_v10 = vmul.f32 %v1970_v7, %v2303_v25 }
 0x3f8   :  { %v442_v13 = vmul.f32 %v1972_v8, %v2303_v25 }
 0x3f9   :  { %v349_v14 = vadd.f32 %v348_v10, %v2305_v27 }
 0x3fa   :  { %v443_v15 = vadd.f32 %v442_v13, %v2305_v27 }
 0x3fb   :  { %352 = vrot.lane.b32.xlu1 %v349_v14, %s2140_s23  ;;  %v350_v21 = vmul.f32 %v349_v14, %v2311_v34 }
 0x3fc   :  { %446 = vrot.lane.b32.xlu0 %v443_v15, %s2140_s23  ;;  %v444_v23 = vmul.f32 0.0, %v443_v15 }
 0x46d   :  { %v353_v17 = vpop.permute.xlu1 %352 }
 0x46e   :  { %v355_v18 = vmul.f32 %v353_v17, %v349_v14  ;;  %v447_v19 = vpop.permute.xlu0 %446 }
 0x46f   :  { %v449_v20 = vmul.f32 %v447_v19, %v443_v15 }
 0x470   :  { %357 = vrot.lane.b32.xlu1 %v355_v18, %s2151_s3 }
 0x471   :  { %451 = vrot.lane.b32.xlu0 %v449_v20, %s2151_s3 }
 0x4e2   :  { %v358_v22 = vpop.permute.xlu1 %357 }
 0x4e3   :  { %v360_v24 = vadd.f32 %v358_v22, %v350_v21  ;;  %v452_v26 = vpop.permute.xlu0 %451 }
 0x4e4   :  { %v2393_v28 = vadd.f32 %v452_v26, %v444_v23 }
 0x4e5   :  { %1973 = vtanh.f32 %v360_v24 }
 0x4e6   :  { %1975 = vtanh.f32 %v2393_v28 }
 0x4ef   :  { %v1974_v29 = vpop.eup %1973 }
 0x4f0   :  { %v1976_v30 = vpop.eup %1975  ;;  %363 = vrot.lane.b32.xlu1 %v1974_v29, %s2140_s23 }
 0x4f1   :  { %457 = vrot.lane.b32.xlu0 %v1976_v30, %s2140_s23 }
 0x562   :  { %v364_v31 = vpop.permute.xlu1 %363 }
 0x563   :  { %v366_v32 = vmul.f32 %v364_v31, %v349_v14  ;;  %v458_v34 = vpop.permute.xlu0 %457 }
 0x564   :  { %v2400_v36 = vmul.f32 %v458_v34, %v443_v15 }
 0x565   :  { %v461_v33 = vpack.c.bf16 %v366_v32, %v366_v32  ;;  %530 = vrot.lane.b32.xlu0 %v366_v32, %s2151_s3  ;;  %v203_v32 = vadd.f32 %v2299_v16, %v2294_v11 }
 0x567   :  { %463 = vrot.lane.b32.xlu1 %v461_v33, %s2151_s3 }
 0x56b   :  { %534 = vrot.lane.b32.xlu1 %v2400_v36, %s2140_s23 }
 0x5d7   :  { %v531_v38 = vpop.permute.xlu0 %530 }
 0x5d9   :  { %v464_v37 = vpop.permute.xlu1 %463 }
 0x5da   :  { %1790 = vmatmul.mubr.msk.bf16.vlgmr.msra.gmra.mrb[8].mxu1 %vm234_vm5, %v464_v37 }
 0x5db   :  { %1806 = vmatpush3.bf16.msra.mxu1 %v2274_v2  ;;  %1809 = vmatprep.mubr.msk.bf16.mxu1 %vm2148_vm0, %v2147_v0 }
 0x5dc   :  { %1807 = vmatprep.subr.bf16.mxu1 %v2147_v0 }
 0x5dd   :  { %v535_v39 = vpop.permute.xlu1 %534 }
 0x5de   :  { %v537_v41 = vsel %vm234_vm5, %v531_v38, %v535_v39 }
 0x5df   :  { %v538_v42 = vpack.c.bf16 %v537_v41, %v537_v41  ;;  %1808 = vmatpush3.bf16.msra.mxu1 %v2278_v9 }
 0x5e0   :  { %1813 = vmatprep.subr.bf16.mxu1 %v2147_v0 }
 0x5e1   :  { %1802 = vmatmul.mubr.msk.bf16.vlgmr.msra.gmra.mrb[12].mxu0 %vm397_vm6, %v538_v42 }
 0x5e2   :  { %1826 = vmatpush3.bf16.msra.mxu0 %v2274_v2  ;;  %1829 = vmatprep.mubr.msk.bf16.mxu0 %vm2148_vm0, %v2147_v0 }
 0x5e3   :  { %1827 = vmatprep.subr.bf16.mxu0 %v2147_v0 }
 0x5e6   :  { %1828 = vmatpush3.bf16.msra.mxu0 %v2278_v9 }
 0x5e7   :  { %1833 = vmatprep.subr.bf16.mxu0 %v2147_v0 }
 0x6ad   :  { %v502_v46 = vpop.f32.mrb[8].mxu1 }
 0x6ae   :  { %v508_v47 = vadd.f32 %v502_v46, %v200_v44  ;;  %v1791_v48 = vpop.f32.mrb[9].mxu1 }
 0x6af   :  { %v505_v53 = vpop.f32.mrb[10].mxu1 }
 0x6b0   :  { %1977 = vtanh.f32 %v508_v47  ;;  %v1792_v54 = vpop.f32.mrb[11].mxu1 }
 0x6b4   :  { %v576_v55 = vpop.f32.mrb[12].mxu0 }
 0x6b5   :  { %v577_v56 = vadd.f32 %v2381_v58, %v576_v55  ;;  %v1803_v57 = vpop.f32.mrb[13].mxu0 }
 0x6b6   :  { %v579_v59 = vpop.f32.mrb[14].mxu0 }
 0x6b7   :  { %1979 = vtanh.f32 %v577_v56  ;;  %v1804_v60 = vpop.f32.mrb[15].mxu0 }
 0x6ba   :  { %v1978_v61 = vpop.eup %1977 }
 0x6bb   :  { %v510_v62 = vmul.f32 %v1978_v61, %v2303_v25 }
 0x6bd   :  { %v511_v63 = vadd.f32 %v510_v62, %v2305_v27 }
 0x6bf   :  { %514 = vrot.lane.b32.xlu0 %v511_v63, %s2140_s23  ;;  %v512_v8 = vmul.f32 %v511_v63, %v360_v24 }
 0x6c1   :  { %v1980_v12 = vpop.eup %1979 }
 0x6c2   :  { %v583_v1 = vmul.f32 %v1980_v12, %v2303_v25 }
 0x6c4   :  { %v584_v3 = vadd.f32 %v583_v1, %v2305_v27 }
 0x6c6   :  { %587 = vrot.lane.b32.xlu1 %v584_v3, %s2140_s23  ;;  %v585_v14 = vmul.f32 %v584_v3, %v2393_v28 }
 0x731   :  { %v515_v4 = vpop.permute.xlu0 %514 }
 0x732   :  { %v517_v5 = vmul.f32 %v515_v4, %v511_v63 }
 0x734   :  { %519 = vrot.lane.b32.xlu0 %v517_v5, %s2151_s3 }
 0x738   :  { %v588_v6 = vpop.permute.xlu1 %587 }
 0x739   :  { %v590_v7 = vmul.f32 %v588_v6, %v584_v3 }
 0x73b   :  { %592 = vrot.lane.b32.xlu1 %v590_v7, %s2151_s3 }
 0x7a6   :  { %v520_v10 = vpop.permute.xlu0 %519 }
 0x7a7   :  { %v2430_v13 = vadd.f32 %v520_v10, %v512_v8 }
 0x7a9   :  { %1981 = vtanh.f32 %v2430_v13 }
 0x7ad   :  { %v593_v15 = vpop.permute.xlu1 %592 }
 0x7ae   :  { %v2434_v17 = vadd.f32 %v593_v15, %v585_v14 }
 0x7b0   :  { %1983 = vtanh.f32 %v2434_v17 }
 0x7b3   :  { %v1982_v18 = vpop.eup %1981 }
 0x7b4   :  { %525 = vrot.lane.b32.xlu0 %v1982_v18, %s2140_s23 }
 0x7ba   :  { %v1984_v19 = vpop.eup %1983 }
 0x7bb   :  { %598 = vrot.lane.b32.xlu1 %v1984_v19, %s2140_s23 }
 0x826   :  { %v526_v20 = vpop.permute.xlu0 %525 }
 0x827   :  { %v528_v21 = vmul.f32 %v526_v20, %v511_v63 }
 0x829   :  { %v602_v22 = vpack.c.bf16 %v528_v21, %v528_v21  ;;  %671 = vrot.lane.b32.xlu1 %v528_v21, %s2151_s3  ;;  %v208_v21 = vadd.f32 %v2294_v11, %v2351_v50 }
 0x82b   :  { %604 = vrot.lane.b32.xlu0 %v602_v22, %s2151_s3 }
 0x82d   :  { %v599_v23 = vpop.permute.xlu1 %598 }
 0x82e   :  { %v2441_v24 = vmul.f32 %v599_v23, %v584_v3 }
 0x830   :  { %675 = vrot.lane.b32.xlu0 %v2441_v24, %s2140_s23 }
 0x89b   :  { %v672_v29 = vpop.permute.xlu1 %671 }
 0x89d   :  { %v605_v26 = vpop.permute.xlu0 %604 }
 0x89e   :  { %1810 = vmatmul.mubr.msk.bf16.vlgmr.msra.gmra.mrb[12].mxu1 %vm234_vm5, %v605_v26 }
 0x89f   :  { %1814 = vmatpush3.bf16.msra.mxu1 %v2317_v35  ;;  %1821 = vmatprep.mubr.msk.bf16.mxu1 %vm2148_vm0, %v2147_v0 }
 0x8a0   :  { %1815 = vmatprep.subr.bf16.mxu1 %v2147_v0 }
 0x8a2   :  { %v676_v28 = vpop.permute.xlu0 %675 }
 0x8a3   :  { %1816 = vmatpush3.bf16.msra.mxu1 %v2323_v40  ;;  %v678_v30 = vsel %vm234_vm5, %v672_v29, %v676_v28 }
 0x8a4   :  { %1817 = vmatprep.subr.bf16.mxu1 %v2147_v0  ;;  %v679_v31 = vpack.c.bf16 %v678_v30, %v678_v30 }
 0x8a7   :  { %1818 = vmatpush3.bf16.msra.mxu1 %v2332_v43 }
 0x8a8   :  { %1819 = vmatprep.subr.bf16.mxu1 %v2147_v0 }
 0x8ab   :  { %1820 = vmatpush3.bf16.msra.mxu1 %v2343_v45 }
 0x8ac   :  { %1845 = vmatprep.subr.bf16.mxu1 %v2147_v0 }
 0x8ae   :  { %1822 = vmatmul.mubr.msk.bf16.vlgmr.msra.gmra.mrb[16].mxu1 %vm397_vm6, %v679_v31 }
 0x8af   :  { %1846 = vmatpush3.bf16.msra.mxu1 %v2274_v2  ;;  %1849 = vmatprep.mubr.msk.bf16.mxu1 %vm2148_vm0, %v2147_v0 }
 0x8b0   :  { %1847 = vmatprep.subr.bf16.mxu1 %v2147_v0 }
 0x8b3   :  { %1848 = vmatpush3.bf16.msra.mxu1 %v2278_v9 }
 0x8b4   :  { %1853 = vmatprep.subr.bf16.mxu1 %v2147_v0 }
 0x971   :  { %v643_v33 = vpop.f32.mrb[12].mxu1 }
 0x972   :  { %v649_v34 = vadd.f32 %v643_v33, %v203_v32  ;;  %v1811_v37 = vpop.f32.mrb[13].mxu1 }
 0x973   :  { %v646_v38 = vpop.f32.mrb[14].mxu1 }
 0x974   :  { %1985 = vtanh.f32 %v649_v34  ;;  %v1812_v39 = vpop.f32.mrb[15].mxu1 }
 0x97e   :  { %v1986_v41 = vpop.eup %1985 }
 0x97f   :  { %v651_v42 = vmul.f32 %v1986_v41, %v2303_v25 }
 0x981   :  { %v717_v44 = vpop.f32.mrb[16].mxu1  ;;  %v652_v46 = vadd.f32 %v651_v42, %v2305_v27 }
 0x982   :  { %v718_v47 = vadd.f32 %v2381_v58, %v717_v44  ;;  %v1823_v48 = vpop.f32.mrb[17].mxu1 }
 0x983   :  { %v720_v53 = vpop.f32.mrb[18].mxu1  ;;  %655 = vrot.lane.b32.xlu1 %v652_v46, %s2140_s23  ;;  %v653_v62 = vmul.f32 %v652_v46, %v2430_v13 }
 0x984   :  { %1987 = vtanh.f32 %v718_v47  ;;  %v1824_v16 = vpop.f32.mrb[19].mxu1 }
 0x98e   :  { %v1988_v54 = vpop.eup %1987 }
 0x98f   :  { %v724_v55 = vmul.f32 %v1988_v54, %v2303_v25 }
 0x991   :  { %v725_v56 = vadd.f32 %v724_v55, %v2305_v27 }
 0x993   :  { %728 = vrot.lane.b32.xlu0 %v725_v56, %s2140_s23  ;;  %v726_v3 = vmul.f32 %v725_v56, %v2434_v17 }
 0x9f5   :  { %v656_v57 = vpop.permute.xlu1 %655 }
 0x9f6   :  { %v658_v59 = vmul.f32 %v656_v57, %v652_v46 }
 0x9f8   :  { %660 = vrot.lane.b32.xlu1 %v658_v59, %s2151_s3 }
 0xa05   :  { %v729_v60 = vpop.permute.xlu0 %728 }
 0xa06   :  { %v731_v61 = vmul.f32 %v729_v60, %v725_v56 }
 0xa08   :  { %733 = vrot.lane.b32.xlu0 %v731_v61, %s2151_s3 }
 0xa6a   :  { %v661_v63 = vpop.permute.xlu1 %660 }
 0xa6b   :  { %v2476_v12 = vadd.f32 %v661_v63, %v653_v62 }
 0xa6d   :  { %1989 = vtanh.f32 %v2476_v12 }
 0xa77   :  { %v1990_v1 = vpop.eup %1989 }
 0xa78   :  { %666 = vrot.lane.b32.xlu1 %v1990_v1, %s2140_s23 }
 0xa7a   :  { %v734_v4 = vpop.permute.xlu0 %733 }
 0xa7b   :  { %v2481_v5 = vadd.f32 %v734_v4, %v726_v3 }
 0xa7d   :  { %1991 = vtanh.f32 %v2481_v5 }
 0xa87   :  { %v1992_v6 = vpop.eup %1991 }
 0xa88   :  { %739 = vrot.lane.b32.xlu0 %v1992_v6, %s2140_s23 }
 0xaea   :  { %v667_v7 = vpop.permute.xlu1 %666 }
 0xaeb   :  { %v669_v8 = vmul.f32 %v667_v7, %v652_v46 }
 0xaed   :  { %v743_v10 = vpack.c.bf16 %v669_v8, %v669_v8  ;;  %812 = vrot.lane.b32.xlu0 %v669_v8, %s2151_s3  ;;  %v211_v8 = vadd.f32 %v2294_v11, %v2355_v52 }
 0xaef   :  { %745 = vrot.lane.b32.xlu1 %v743_v10, %s2151_s3 }
 0xafa   :  { %v740_v13 = vpop.permute.xlu0 %739 }
 0xafb   :  { %v2487_v14 = vmul.f32 %v740_v13, %v725_v56 }
 0xafd   :  { %816 = vrot.lane.b32.xlu1 %v2487_v14, %s2140_s23 }
 0xb5f   :  { %v813_v17 = vpop.permute.xlu0 %812 }
 0xb61   :  { %v746_v15 = vpop.permute.xlu1 %745 }
 0xb62   :  { %1830 = vmatmul.mubr.msk.bf16.vlgmr.msra.gmra.mrb[16].mxu0 %vm234_vm5, %v746_v15 }
 0xb63   :  { %1834 = vmatpush3.bf16.msra.mxu0 %v2317_v35  ;;  %1841 = vmatprep.mubr.msk.bf16.mxu0 %vm2148_vm0, %v2147_v0 }
 0xb64   :  { %1835 = vmatprep.subr.bf16.mxu0 %v2147_v0 }
 0xb67   :  { %1836 = vmatpush3.bf16.msra.mxu0 %v2323_v40 }
 0xb68   :  { %1837 = vmatprep.subr.bf16.mxu0 %v2147_v0 }
 0xb6b   :  { %1838 = vmatpush3.bf16.msra.mxu0 %v2332_v43 }
 0xb6c   :  { %1839 = vmatprep.subr.bf16.mxu0 %v2147_v0 }
 0xb6f   :  { %v817_v18 = vpop.permute.xlu1 %816  ;;  %1840 = vmatpush3.bf16.msra.mxu0 %v2343_v45 }
 0xb70   :  { %v819_v19 = vsel %vm234_vm5, %v813_v17, %v817_v18  ;;  %1865 = vmatprep.subr.bf16.mxu0 %v2147_v0 }
 0xb71   :  { %v820_v20 = vpack.c.bf16 %v819_v19, %v819_v19 }
 0xb73   :  { %1842 = vmatmul.mubr.msk.bf16.vlgmr.msra.gmra.mrb[20].mxu0 %vm397_vm6, %v820_v20 }
 0xb74   :  { %1866 = vmatpush3.bf16.msra.mxu0 %v2274_v2  ;;  %1869 = vmatprep.mubr.msk.bf16.mxu0 %vm2148_vm0, %v2147_v0 }
 0xb75   :  { %1867 = vmatprep.subr.bf16.mxu0 %v2147_v0 }
 0xb78   :  { %1868 = vmatpush3.bf16.msra.mxu0 %v2278_v9 }
 0xb79   :  { %1873 = vmatprep.subr.bf16.mxu0 %v2147_v0 }
 0xc35   :  { %v784_v22 = vpop.f32.mrb[16].mxu0 }
 0xc36   :  { %v790_v23 = vadd.f32 %v784_v22, %v208_v21  ;;  %v1831_v26 = vpop.f32.mrb[17].mxu0 }
 0xc37   :  { %v787_v28 = vpop.f32.mrb[18].mxu0 }
 0xc38   :  { %1993 = vtanh.f32 %v790_v23  ;;  %v1832_v29 = vpop.f32.mrb[19].mxu0 }
 0xc42   :  { %v1994_v30 = vpop.eup %1993 }
 0xc43   :  { %v792_v31 = vmul.f32 %v1994_v30, %v2303_v25 }
 0xc45   :  { %v793_v32 = vadd.f32 %v792_v31, %v2305_v27 }
 0xc46   :  { %v858_v33 = vpop.f32.mrb[20].mxu0 }
 0xc47   :  { %v859_v34 = vadd.f32 %v2381_v58, %v858_v33  ;;  %v1843_v37 = vpop.f32.mrb[21].mxu0  ;;  %796 = vrot.lane.b32.xlu0 %v793_v32, %s2140_s23  ;;  %v794_v53 = vmul.f32 %v793_v32, %v2476_v12 }
 0xc48   :  { %v861_v38 = vpop.f32.mrb[22].mxu0 }
 0xc49   :  { %1995 = vtanh.f32 %v859_v34  ;;  %v1844_v50 = vpop.f32.mrb[23].mxu0 }
 0xc53   :  { %v1996_v39 = vpop.eup %1995 }
 0xc54   :  { %v865_v41 = vmul.f32 %v1996_v39, %v2303_v25 }
 0xc56   :  { %v866_v42 = vadd.f32 %v865_v41, %v2305_v27 }
 0xc58   :  { %869 = vrot.lane.b32.xlu1 %v866_v42, %s2140_s23  ;;  %v867_v56 = vmul.f32 %v866_v42, %v2481_v5 }
 0xcb9   :  { %v797_v44 = vpop.permute.xlu0 %796 }
 0xcba   :  { %v799_v46 = vmul.f32 %v797_v44, %v793_v32 }
 0xcbc   :  { %801 = vrot.lane.b32.xlu0 %v799_v46, %s2151_s3 }
 0xcca   :  { %v870_v47 = vpop.permute.xlu1 %869 }
 0xccb   :  { %v872_v48 = vmul.f32 %v870_v47, %v866_v42 }
 0xccd   :  { %874 = vrot.lane.b32.xlu1 %v872_v48, %s2151_s3 }
 0xd2e   :  { %v802_v16 = vpop.permute.xlu0 %801 }
 0xd2f   :  { %v2522_v54 = vadd.f32 %v802_v16, %v794_v53 }
 0xd31   :  { %1997 = vtanh.f32 %v2522_v54 }
 0xd3b   :  { %v1998_v55 = vpop.eup %1997 }
 0xd3c   :  { %807 = vrot.lane.b32.xlu0 %v1998_v55, %s2140_s23 }
 0xd3f   :  { %v875_v57 = vpop.permute.xlu1 %874 }
 0xd40   :  { %v2527_v59 = vadd.f32 %v875_v57, %v867_v56 }
 0xd42   :  { %1999 = vtanh.f32 %v2527_v59 }
 0xd4c   :  { %v2000_v60 = vpop.eup %1999 }
 0xd4d   :  { %880 = vrot.lane.b32.xlu1 %v2000_v60, %s2140_s23  ;;  %v216_v60 = vadd.f32 %v2349_v49, %v2294_v11 }
 0xdae   :  { %v808_v61 = vpop.permute.xlu0 %807 }
 0xdaf   :  { %v810_v62 = vmul.f32 %v808_v61, %v793_v32 }
 0xdb1   :  { %v884_v63 = vpack.c.bf16 %v810_v62, %v810_v62  ;;  %953 = vrot.lane.b32.xlu1 %v810_v62, %s2151_s3 }
 0xdb3   :  { %886 = vrot.lane.b32.xlu0 %v884_v63, %s2151_s3 }
 0xdbf   :  { %v881_v12 = vpop.permute.xlu1 %880 }
 0xdc0   :  { %v2533_v1 = vmul.f32 %v881_v12, %v866_v42 }
 0xdc2   :  { %957 = vrot.lane.b32.xlu0 %v2533_v1, %s2140_s23 }
 0xe23   :  { %v954_v4 = vpop.permute.xlu1 %953 }
 0xe25   :  { %v887_v3 = vpop.permute.xlu0 %886 }
 0xe26   :  { %1850 = vmatmul.mubr.msk.bf16.vlgmr.msra.gmra.mrb[20].mxu1 %vm234_vm5, %v887_v3 }
 0xe27   :  { %1854 = vmatpush3.bf16.msra.mxu1 %v2317_v35  ;;  %1861 = vmatprep.mubr.msk.bf16.mxu1 %vm2148_vm0, %v2147_v0 }
 0xe28   :  { %1855 = vmatprep.subr.bf16.mxu1 %v2147_v0 }
 0xe2b   :  { %1856 = vmatpush3.bf16.msra.mxu1 %v2323_v40 }
 0xe2c   :  { %1857 = vmatprep.subr.bf16.mxu1 %v2147_v0 }
 0xe2f   :  { %1858 = vmatpush3.bf16.msra.mxu1 %v2332_v43 }
 0xe30   :  { %1859 = vmatprep.subr.bf16.mxu1 %v2147_v0 }
 0xe33   :  { %1860 = vmatpush3.bf16.msra.mxu1 %v2343_v45 }
 0xe34   :  { %v958_v5 = vpop.permute.xlu0 %957  ;;  %1885 = vmatprep.subr.bf16.mxu1 %v2147_v0 }
 0xe35   :  { %v960_v6 = vsel %vm234_vm5, %v954_v4, %v958_v5 }
 0xe36   :  { %v961_v7 = vpack.c.bf16 %v960_v6, %v960_v6 }
 0xe38   :  { %1862 = vmatmul.mubr.msk.bf16.vlgmr.msra.gmra.mrb[24].mxu1 %vm397_vm6, %v961_v7 }
 0xe39   :  { %1886 = vmatpush3.bf16.msra.mxu1 %v2274_v2  ;;  %1889 = vmatprep.mubr.msk.bf16.mxu1 %vm2148_vm0, %v2147_v0 }
 0xe3a   :  { %1887 = vmatprep.subr.bf16.mxu1 %v2147_v0 }
 0xe3d   :  { %1888 = vmatpush3.bf16.msra.mxu1 %v2278_v9 }
 0xe3e   :  { %1893 = vmatprep.subr.bf16.mxu1 %v2147_v0 }
 0xef9   :  { %v925_v10 = vpop.f32.mrb[20].mxu1 }
 0xefa   :  { %v931_v13 = vadd.f32 %v925_v10, %v211_v8  ;;  %v1851_v15 = vpop.f32.mrb[21].mxu1 }
 0xefb   :  { %v928_v17 = vpop.f32.mrb[22].mxu1 }
 0xefc   :  { %2001 = vtanh.f32 %v931_v13  ;;  %v1852_v18 = vpop.f32.mrb[23].mxu1 }
 0xf06   :  { %v2002_v19 = vpop.eup %2001 }
 0xf07   :  { %v933_v2 = vmul.f32 %v2002_v19, %v2303_v25 }
 0xf09   :  { %v934_v20 = vadd.f32 %v933_v2, %v2305_v27 }
 0xf0b   :  { %v999_v21 = vpop.f32.mrb[24].mxu1  ;;  %937 = vrot.lane.b32.xlu1 %v934_v20, %s2140_s23  ;;  %v935_v34 = vmul.f32 %v934_v20, %v2522_v54 }
 0xf0c   :  { %v1000_v9 = vadd.f32 %v2381_v58, %v999_v21  ;;  %v1863_v22 = vpop.f32.mrb[25].mxu1 }
 0xf0d   :  { %v1002_v23 = vpop.f32.mrb[26].mxu1 }
 0xf0e   :  { %2003 = vtanh.f32 %v1000_v9  ;;  %v1864_v52 = vpop.f32.mrb[27].mxu1 }
 0xf18   :  { %v2004_v26 = vpop.eup %2003 }
 0xf19   :  { %v1006_v28 = vmul.f32 %v2004_v26, %v2303_v25 }
 0xf1b   :  { %v1007_v29 = vadd.f32 %v1006_v28, %v2305_v27 }
 0xf1d   :  { %1010 = vrot.lane.b32.xlu0 %v1007_v29, %s2140_s23  ;;  %v1008_v39 = vmul.f32 %v1007_v29, %v2527_v59 }
 0xf7d   :  { %v938_v30 = vpop.permute.xlu1 %937 }
 0xf7e   :  { %v940_v31 = vmul.f32 %v938_v30, %v934_v20 }
 0xf80   :  { %942 = vrot.lane.b32.xlu1 %v940_v31, %s2151_s3 }
 0xf8f   :  { %v1011_v32 = vpop.permute.xlu0 %1010 }
 0xf90   :  { %v1013_v33 = vmul.f32 %v1011_v32, %v1007_v29 }
 0xf92   :  { %1015 = vrot.lane.b32.xlu0 %v1013_v33, %s2151_s3 }
 0xff2   :  { %v943_v37 = vpop.permute.xlu1 %942 }
 0xff3   :  { %v2568_v38 = vadd.f32 %v943_v37, %v935_v34 }
 0xff5   :  { %2005 = vtanh.f32 %v2568_v38 }
 0xfff   :  { %v2006_v50 = vpop.eup %2005 }
0x1000   :  { %948 = vrot.lane.b32.xlu1 %v2006_v50, %s2140_s23 }
0x1004   :  { %v1016_v41 = vpop.permute.xlu0 %1015 }
0x1005   :  { %v2573_v42 = vadd.f32 %v1016_v41, %v1008_v39 }
0x1007   :  { %2007 = vtanh.f32 %v2573_v42 }
0x1011   :  { %v2008_v44 = vpop.eup %2007 }
0x1012   :  { %1021 = vrot.lane.b32.xlu0 %v2008_v44, %s2140_s23 }
0x1072   :  { %v949_v46 = vpop.permute.xlu1 %948 }
0x1073   :  { %v951_v47 = vmul.f32 %v949_v46, %v934_v20 }
0x1075   :  { %v1025_v48 = vpack.c.bf16 %v951_v47, %v951_v47  ;;  %1094 = vrot.lane.b32.xlu0 %v951_v47, %s2151_s3 }
0x1077   :  { %1027 = vrot.lane.b32.xlu1 %v1025_v48, %s2151_s3 }
0x1084   :  { %v1022_v53 = vpop.permute.xlu0 %1021 }
0x1085   :  { %v2579_v16 = vmul.f32 %v1022_v53, %v1007_v29 }
0x1087   :  { %1098 = vrot.lane.b32.xlu1 %v2579_v16, %s2140_s23 }
0x10e7   :  { %v1095_v55 = vpop.permute.xlu0 %1094 }
0x10e9   :  { %v1028_v54 = vpop.permute.xlu1 %1027 }
0x10ea   :  { %1870 = vmatmul.mubr.msk.bf16.vlgmr.msra.gmra.mrb[24].mxu0 %vm234_vm5, %v1028_v54 }
0x10eb   :  { %1874 = vmatpush3.bf16.msra.mxu0 %v2317_v35  ;;  %1881 = vmatprep.mubr.msk.bf16.mxu0 %vm2148_vm0, %v2147_v0 }
0x10ec   :  { %1875 = vmatprep.subr.bf16.mxu0 %v2147_v0 }
0x10ef   :  { %1876 = vmatpush3.bf16.msra.mxu0 %v2323_v40 }
0x10f0   :  { %1877 = vmatprep.subr.bf16.mxu0 %v2147_v0 }
0x10f3   :  { %1878 = vmatpush3.bf16.msra.mxu0 %v2332_v43 }
0x10f4   :  { %1879 = vmatprep.subr.bf16.mxu0 %v2147_v0 }
0x10f7   :  { %1880 = vmatpush3.bf16.msra.mxu0 %v2343_v45 }
0x10f8   :  { %1905 = vmatprep.subr.bf16.mxu0 %v2147_v0 }
0x10f9   :  { %v1099_v56 = vpop.permute.xlu1 %1098 }
0x10fa   :  { %v1101_v57 = vsel %vm234_vm5, %v1095_v55, %v1099_v56 }
0x10fb   :  { %v1102_v59 = vpack.c.bf16 %v1101_v57, %v1101_v57 }
0x10fd   :  { %1882 = vmatmul.mubr.msk.bf16.vlgmr.msra.gmra.mrb[28].mxu0 %vm397_vm6, %v1102_v59 }
0x10fe   :  { %1906 = vmatpush3.bf16.msra.mxu0 %v2317_v35  ;;  %1913 = vmatprep.mubr.msk.bf16.mxu0 %vm2148_vm0, %v2147_v0 }
0x10ff   :  { %1907 = vmatprep.subr.bf16.mxu0 %v2147_v0 }
0x1102   :  { %1908 = vmatpush3.bf16.msra.mxu0 %v2323_v40 }
0x1103   :  { %1909 = vmatprep.subr.bf16.mxu0 %v2147_v0 }
0x1106   :  { %1910 = vmatpush3.bf16.msra.mxu0 %v2332_v43 }
0x1107   :  { %1911 = vmatprep.subr.bf16.mxu0 %v2147_v0 }
0x110a   :  { %1912 = vmatpush3.bf16.msra.mxu0 %v2343_v45 }
0x11bd   :  { %v1066_v61 = vpop.f32.mrb[24].mxu0 }
0x11be   :  { %v1072_v62 = vadd.f32 %v1066_v61, %v216_v60  ;;  %v1871_v63 = vpop.f32.mrb[25].mxu0 }
0x11bf   :  { %v1069_v12 = vpop.f32.mrb[26].mxu0 }
0x11c0   :  { %2009 = vtanh.f32 %v1072_v62  ;;  %v1872_v3 = vpop.f32.mrb[27].mxu0 }
0x11ca   :  { %v2010_v4 = vpop.eup %2009 }
0x11cb   :  { %v1074_v5 = vmul.f32 %v2010_v4, %v2303_v25 }
0x11cd   :  { %v1075_v6 = vadd.f32 %v1074_v5, %v2305_v27 }
0x11cf   :  { %1078 = vrot.lane.b32.xlu0 %v1075_v6, %s2140_s23  ;;  %v1076_v9 = vmul.f32 %v1075_v6, %v2568_v38 }
0x11d0   :  { %v1140_v7 = vpop.f32.mrb[28].mxu0 }
0x11d1   :  { %v1141_v8 = vadd.f32 %v2381_v58, %v1140_v7  ;;  %v1883_v10 = vpop.f32.mrb[29].mxu0 }
0x11d2   :  { %v1143_v13 = vpop.f32.mrb[30].mxu0 }
0x11d3   :  { %2011 = vtanh.f32 %v1141_v8  ;;  %v1884_v49 = vpop.f32.mrb[31].mxu0 }
0x11dd   :  { %v2012_v15 = vpop.eup %2011 }
0x11de   :  { %v1147_v17 = vmul.f32 %v2012_v15, %v2303_v25 }
0x11e0   :  { %v1148_v18 = vadd.f32 %v1147_v17, %v2305_v27 }
0x11e2   :  { %1151 = vrot.lane.b32.xlu1 %v1148_v18, %s2140_s23  ;;  %v1149_v26 = vmul.f32 %v1148_v18, %v2573_v42  ;;  %v219_v42 = vadd.f32 %v2353_v51, %v2294_v11 }
0x1241   :  { %v1079_v19 = vpop.permute.xlu0 %1078 }
0x1242   :  { %v1081_v2 = vmul.f32 %v1079_v19, %v1075_v6 }
0x1244   :  { %1083 = vrot.lane.b32.xlu0 %v1081_v2, %s2151_s3 }
0x1254   :  { %v1152_v20 = vpop.permute.xlu1 %1151 }
0x1255   :  { %v1154_v21 = vmul.f32 %v1152_v20, %v1148_v18 }
0x1257   :  { %1156 = vrot.lane.b32.xlu1 %v1154_v21, %s2151_s3 }
0x12b6   :  { %v1084_v22 = vpop.permute.xlu0 %1083 }
0x12b7   :  { %v1086_v23 = vadd.f32 %v1084_v22, %v1076_v9 }
0x12b9   :  { %2013 = vtanh.f32 %v1086_v23 }
0x12c3   :  { %v2014_v52 = vpop.eup %2013 }
0x12c4   :  { %1089 = vrot.lane.b32.xlu0 %v2014_v52, %s2140_s23 }
0x12c9   :  { %v1157_v28 = vpop.permute.xlu1 %1156 }
0x12ca   :  { %v1159_v29 = vadd.f32 %v1157_v28, %v1149_v26 }
0x12cc   :  { %2015 = vtanh.f32 %v1159_v29 }
0x12d6   :  { %v2016_v30 = vpop.eup %2015 }
0x12d7   :  { %1162 = vrot.lane.b32.xlu1 %v2016_v30, %s2140_s23 }
0x1336   :  { %v1090_v31 = vpop.permute.xlu0 %1089 }
0x1337   :  { %v1092_v32 = vmul.f32 %v1090_v31, %v1075_v6 }
0x1339   :  { %v1166_v33 = vpack.c.bf16 %v1092_v32, %v1092_v32  ;;  %1235 = vrot.lane.b32.xlu1 %v1092_v32, %s2151_s3  ;;  %v1380_v32 = vpack.c.bf16 %v2441_v24, %v2400_v36  ;;  %v1381_v24 = vpack.c.bf16 %v2533_v1, %v2487_v14  ;;  %v1964_v14 = vld [vmem:[%s2731_s8 + $0x8] sm:$0xff]  }
0x133b   :  { %1168 = vrot.lane.b32.xlu0 %v1166_v33, %s2151_s3 }
0x1349   :  { %v1163_v34 = vpop.permute.xlu1 %1162 }
0x134a   :  { %v2622_v37 = vmul.f32 %v1163_v34, %v1148_v18 }
0x134c   :  { %1239 = vrot.lane.b32.xlu0 %v2622_v37, %s2140_s23  ;;  %v1382_v33 = vpack.c.bf16 %v2622_v37, %v2579_v16 }
0x13ab   :  { %v1236_v50 = vpop.permute.xlu1 %1235 }
0x13ad   :  { %v1169_v38 = vpop.permute.xlu0 %1168 }
0x13ae   :  { %1890 = vmatmul.mubr.msk.bf16.vlgmr.msra.gmra.mrb[28].mxu1 %vm234_vm5, %v1169_v38 }
0x13af   :  { %1894 = vmatpush3.bf16.msra.mxu1 %v2317_v35  ;;  %1901 = vmatprep.mubr.msk.bf16.mxu1 %vm2148_vm0, %v2147_v0 }
0x13b0   :  { %1895 = vmatprep.subr.bf16.mxu1 %v2147_v0 }
0x13b3   :  { %1896 = vmatpush3.bf16.msra.mxu1 %v2323_v40 }
0x13b4   :  { %1897 = vmatprep.subr.bf16.mxu1 %v2147_v0 }
0x13b7   :  { %1898 = vmatpush3.bf16.msra.mxu1 %v2332_v43 }
0x13b8   :  { %1899 = vmatprep.subr.bf16.mxu1 %v2147_v0 }
0x13bb   :  { %1900 = vmatpush3.bf16.msra.mxu1 %v2343_v45 }
0x13be   :  { %v1240_v39 = vpop.permute.xlu0 %1239 }
0x13bf   :  { %v1242_v41 = vsel %vm234_vm5, %v1236_v50, %v1240_v39 }
0x13c0   :  { %v1243_v35 = vpack.c.bf16 %v1242_v41, %v1242_v41 }
0x13c2   :  { %1902 = vmatmul.mubr.msk.bf16.vlgmr.msra.gmra.mrb[32].mxu1 %vm397_vm6, %v1243_v35 }
0x1481   :  { %v1207_v44 = vpop.f32.mrb[28].mxu1 }
0x1482   :  { %v1213_v40 = vadd.f32 %v1207_v44, %v219_v42  ;;  %v1891_v46 = vpop.f32.mrb[29].mxu1  ;;  %v1963_v42 = vld [vmem:[%s2731_s8] sm:$0xff]  }
0x1483   :  { %v1210_v47 = vpop.f32.mrb[30].mxu1  ;;  %1929 = vmatprep.subr.bf16.mxu0 %v1963_v42  ;;  %v1652_v44 = vld [vmem:[%s2730_s7] ss:$0 sm:$0xff] }
0x1484   :  { %2017 = vtanh.f32 %v1213_v40  ;;  %v1892_v43 = vpop.f32.mrb[31].mxu1 }
0x148e   :  { %v2018_v48 = vpop.eup %2017 }
0x148f   :  { %v1215_v0 = vmul.f32 %v2018_v48, %v2303_v25 }
0x1491   :  { %v1216_v45 = vadd.f32 %v1215_v0, %v2305_v27 }
0x1493   :  { %1219 = vrot.lane.b32.xlu1 %v1216_v45, %s2140_s23  ;;  %v1217_v12 = vmul.f32 %v1216_v45, %v1086_v23 }
0x1495   :  { %v1281_v53 = vpop.f32.mrb[32].mxu1 }
0x1496   :  { %v1282_v54 = vadd.f32 %v2381_v58, %v1281_v53  ;;  %v1903_v55 = vpop.f32.mrb[33].mxu1 }
0x1497   :  { %v1284_v56 = vpop.f32.mrb[34].mxu1 }
0x1498   :  { %2019 = vtanh.f32 %v1282_v54  ;;  %v1904_v11 = vpop.f32.mrb[35].mxu1 }
0x14a2   :  { %v2020_v51 = vpop.eup %2019 }
0x14a3   :  { %v1288_v57 = vmul.f32 %v2020_v51, %v2303_v25 }
0x14a5   :  { %v1289_v59 = vadd.f32 %v1288_v57, %v2305_v27 }
0x14a7   :  { %1292 = vrot.lane.b32.xlu0 %v1289_v59, %s2140_s23  ;;  %v1290_v6 = vmul.f32 %v1289_v59, %v1159_v29 }
0x1505   :  { %v1220_v60 = vpop.permute.xlu1 %1219 }
0x1506   :  { %v1222_v61 = vmul.f32 %v1220_v60, %v1216_v45 }
0x1508   :  { %1224 = vrot.lane.b32.xlu1 %v1222_v61, %s2151_s3 }
0x1519   :  { %v1293_v62 = vpop.permute.xlu0 %1292 }
0x151a   :  { %v1295_v63 = vmul.f32 %v1293_v62, %v1289_v59 }
0x151c   :  { %1297 = vrot.lane.b32.xlu0 %v1295_v63, %s2151_s3 }
0x157a   :  { %v1225_v3 = vpop.permute.xlu1 %1224 }
0x157b   :  { %v1227_v4 = vadd.f32 %v1225_v3, %v1217_v12 }
0x157d   :  { %2021 = vtanh.f32 %v1227_v4 }
0x1587   :  { %v2022_v5 = vpop.eup %2021 }
0x1588   :  { %1230 = vrot.lane.b32.xlu1 %v2022_v5, %s2140_s23 }
0x158e   :  { %v1298_v7 = vpop.permute.xlu0 %1297 }
0x158f   :  { %v1300_v8 = vadd.f32 %v1298_v7, %v1290_v6 }
0x1591   :  { %2023 = vtanh.f32 %v1300_v8 }
0x159b   :  { %v2024_v10 = vpop.eup %2023 }
0x159c   :  { %1303 = vrot.lane.b32.xlu0 %v2024_v10, %s2140_s23 }
0x15fa   :  { %v1231_v13 = vpop.permute.xlu1 %1230 }
0x15fb   :  { %v1233_v49 = vmul.f32 %v1231_v13, %v1216_v45 }
0x15fd   :  { %1308 = vrot.lane.b32.xlu1 %v1233_v49, %s2151_s3  ;;  %v1659_v49 = vld [vmem:[%s2732_s9] ss:$0 sm:$0xff] }
0x160e   :  { %v1304_v15 = vpop.permute.xlu0 %1303 }
0x160f   :  { %v1306_v17 = vmul.f32 %v1304_v15, %v1289_v59 }
0x1611   :  { %1312 = vrot.lane.b32.xlu0 %v1306_v17, %s2140_s23 }
0x166f   :  { %v1309_v18 = vpop.permute.xlu1 %1308 }
0x1683   :  { %v1313_v19 = vpop.permute.xlu0 %1312 }
0x1684   :  { %v1315_v2 = vsel %vm234_vm5, %v1309_v18, %v1313_v19 }
0x1685   :  { %v1316_v20 = vpack.c.bf16 %v1315_v2, %v1315_v2 }
0x1687   :  { %1914 = vmatmul.mubr.msk.bf16.vlgmr.msra.gmra.mrb[32].mxu0 %vm397_vm6, %v1316_v20 }
0x1688   :  { %1930 = vmatpush3.bf16.msra.mxu0 %v1963_v42 }
0x1689   :  { %1931 = vmatprep.subr.bf16.mxu0 %v1964_v14 }
0x168c   :  { %1932 = vmatpush3.bf16.msra.mxu0 %v1964_v14 }
0x175a   :  { %v1354_v21 = vpop.f32.mrb[32].mxu0 }
0x175b   :  { %v1355_v9 = vadd.f32 %v2381_v58, %v1354_v21  ;;  %v1915_v22 = vpop.f32.mrb[33].mxu0  ;;  %v1961_v58 = vld [vmem:[#allocation7] sm:$0xff]  }
0x175c   :  { %v1357_v23 = vpop.f32.mrb[34].mxu0  ;;  %1917 = vmatprep.subr.bf16.mxu1 %v1961_v58 }
0x175d   :  { %2025 = vtanh.f32 %v1355_v9  ;;  %v1916_v52 = vpop.f32.mrb[35].mxu0  ;;  %1918 = vmatpush3.bf16.msra.mxu1 %v1961_v58 }
0x1767   :  { %v2026_v26 = vpop.eup %2025 }
0x1768   :  { %v1361_v28 = vmul.f32 %v2026_v26, %v2303_v25 }
0x176a   :  { %v1362_v29 = vadd.f32 %v1361_v28, %v2305_v27  ;;  %v1962_v27 = vld [vmem:[#allocation7 + $0x8] sm:$0xff]  }
0x176b   :  { %1919 = vmatprep.subr.bf16.mxu1 %v1962_v27 }
0x176c   :  { %1365 = vrot.lane.b32.xlu1 %v1362_v29, %s2140_s23  ;;  %v1363_v25 = vmul.f32 %v1362_v29, %v1300_v8  ;;  %1920 = vmatpush3.bf16.msra.mxu1 %v1962_v27 }
0x17de   :  { %v1366_v30 = vpop.permute.xlu1 %1365 }
0x17df   :  { %v1368_v31 = vmul.f32 %v1366_v30, %v1362_v29 }
0x17e1   :  { %1370 = vrot.lane.b32.xlu0 %v1368_v31, %s2151_s3 }
0x17e5   :  { %1399 = vrot.lane.b32.xlu0 %v1380_v32, %s2151_s3 }
0x17e9   :  { %1403 = vrot.lane.b32.xlu0 %v1382_v33, %s2151_s3 }
0x1853   :  { %v1371_v34 = vpop.permute.xlu0 %1370 }
0x1854   :  { %v1373_v38 = vadd.f32 %v1371_v34, %v1363_v25 }
0x1856   :  { %2027 = vtanh.f32 %v1373_v38 }
0x1857   :  { %v1400_v50 = vpop.permute.xlu0 %1399 }
0x1858   :  { %1921 = vmatprep.mubr.msk.bf16.mxu1 %vm234_vm5, %v1400_v50 }
0x185b   :  { %v1404_v35 = vpop.permute.xlu0 %1403 }
0x1860   :  { %v2028_v36 = vpop.eup %2027 }
0x1861   :  { %1376 = vrot.lane.b32.xlu1 %v2028_v36, %s2140_s23 }
0x1865   :  { %1401 = vrot.lane.b32.xlu1 %v1381_v24, %s2151_s3 }
0x18d3   :  { %v1377_v16 = vpop.permute.xlu1 %1376 }
0x18d4   :  { %v1379_v37 = vmul.f32 %v1377_v16, %v1362_v29 }
0x18d6   :  { %v1383_v39 = vpack.c.bf16 %v1379_v37, %v1306_v17 }
0x18d7   :  { %v1402_v41 = vpop.permute.xlu1 %1401 }
0x18d8   :  { %1405 = vrot.lane.b32.xlu1 %v1383_v39, %s2151_s3  ;;  %1922 = vmatmul.mubr.msk.bf16.vlgmr.msra.gmra.mrb[36].mxu1 %vm234_vm5, %v1402_v41 }
0x18d9   :  { %1925 = vmatprep.mubr.msk.bf16.mxu1 %vm234_vm5, %v1404_v35 }
0x194a   :  { %v1406_v1 = vpop.permute.xlu1 %1405 }
0x194b   :  { %1926 = vmatmul.mubr.msk.bf16.gmra.mrb[40].mxu1 %vm234_vm5, %v1406_v1 }
0x19ab   :  { %v1923_v40 = vpop.f32.mrb[36].mxu1 }
0x19ac   :  { %v1474_v46 = vadd.f32 %v1923_v40, %v1652_v44  ;;  %v1465_v47 = vpop.f32.mrb[37].mxu1 }
0x19ad   :  { %v1466_v43 = vadd.f32 %v1652_v44, %v1465_v47  ;;  %v1924_v48 = vpop.f32.mrb[38].mxu1 }
0x19ae   :  { %2029 = vtanh.f32 %v1474_v46  ;;  %v1477_v0 = vadd.f32 %v1924_v48, %v1652_v44  ;;  %v1468_v45 = vpop.f32.mrb[39].mxu1 }
0x19af   :  { %2031 = vtanh.f32 %v1466_v43  ;;  %v1469_v53 = vadd.f32 %v1652_v44, %v1468_v45 }
0x19b0   :  { %2033 = vtanh.f32 %v1477_v0 }
0x19b1   :  { %2035 = vtanh.f32 %v1469_v53 }
0x19b8   :  { %v2030_v54 = vpop.eup %2029 }
0x19b9   :  { %v2032_v55 = vpop.eup %2031 }
0x19ba   :  { %v2034_v56 = vpop.eup %2033 }
0x19bb   :  { %v2036_v11 = vpop.eup %2035  ;;  %v1505_v51 = vpack.c.bf16 %v2034_v56, %v2030_v54 }
0x19bc   :  { %v1504_v57 = vpack.c.bf16 %v2036_v11, %v2032_v55 }
0x19be   :  { %1933 = vmatprep.mubr.msk.bf16.mxu0 %vm234_vm5, %v1504_v57 }
0x19bf   :  { %1934 = vmatmul.mubr.msk.bf16.vlgmr.msra.gmra.mrb[36].mxu0 %vm234_vm5, %v1505_v51 }
0x1a1e   :  { %v1927_v59 = vpop.f32.mrb[40].mxu1 }
0x1a1f   :  { %v1490_v60 = vadd.f32 %v1927_v59, %v1652_v44  ;;  %v1481_v61 = vpop.f32.mrb[41].mxu1 }
0x1a20   :  { %v1482_v62 = vadd.f32 %v1652_v44, %v1481_v61  ;;  %v1928_v63 = vpop.f32.mrb[42].mxu1 }
0x1a21   :  { %2037 = vtanh.f32 %v1490_v60  ;;  %v1493_v12 = vadd.f32 %v1928_v63, %v1652_v44  ;;  %v1484_v3 = vpop.f32.mrb[43].mxu1 }
0x1a22   :  { %2039 = vtanh.f32 %v1482_v62  ;;  %v1485_v4 = vadd.f32 %v1652_v44, %v1484_v3 }
0x1a23   :  { %2041 = vtanh.f32 %v1493_v12 }
0x1a24   :  { %2043 = vtanh.f32 %v1485_v4 }
0x1a2b   :  { %v2038_v5 = vpop.eup %2037 }
0x1a2c   :  { %v2040_v6 = vpop.eup %2039 }
0x1a2d   :  { %v2042_v7 = vpop.eup %2041 }
0x1a2e   :  { %v2044_v8 = vpop.eup %2043  ;;  %v1507_v10 = vpack.c.bf16 %v2042_v7, %v2038_v5 }
0x1a2f   :  { %v1506_v13 = vpack.c.bf16 %v2044_v8, %v2040_v6 }
0x1a31   :  { %1937 = vmatprep.mubr.msk.bf16.mxu0 %vm234_vm5, %v1506_v13 }
0x1a32   :  { %1938 = vmatmul.mubr.msk.bf16.gmra.mrb[40].mxu0 %vm234_vm5, %v1507_v10 }
0x1a92   :  { %v1935_v15 = vpop.f32.mrb[36].mxu0 }
0x1a93   :  { %v1586_v17 = vadd.f32 %v1935_v15, %v1659_v49  ;;  %v1577_v18 = vpop.f32.mrb[37].mxu0 }
0x1a94   :  { %v1578_v19 = vadd.f32 %v1659_v49, %v1577_v18  ;;  %v1936_v2 = vpop.f32.mrb[38].mxu0 }
0x1a95   :  { %1611 = vst.msk [vmem:[%s2733_s10 + $0x10] sm:$0xff] %vm1608_vm7, %v1586_v17  ;;  %v1589_v20 = vadd.f32 %v1936_v2, %v1659_v49  ;;  %v1580_v21 = vpop.f32.mrb[39].mxu0 }
0x1a96   :  { %1609 = vst.msk [vmem:[%s2733_s10] sm:$0xff] %vm1608_vm7, %v1578_v19  ;;  %v1581_v9 = vadd.f32 %v1659_v49, %v1580_v21 }
0x1a97   :  { %1612 = vst.msk [vmem:[%s2733_s10 + $0x18] sm:$0xff] %vm1608_vm7, %v1589_v20 }
0x1a98   :  { %1610 = vst.msk [vmem:[%s2733_s10 + $0x8] sm:$0xff] %vm1608_vm7, %v1581_v9 }
0x1b05   :  { %v1939_v22 = vpop.f32.mrb[40].mxu0 }
0x1b06   :  { %v1602_v23 = vadd.f32 %v1939_v22, %v1659_v49  ;;  %v1593_v52 = vpop.f32.mrb[41].mxu0 }
0x1b07   :  { %v1594_v26 = vadd.f32 %v1659_v49, %v1593_v52  ;;  %v1940_v28 = vpop.f32.mrb[42].mxu0 }
0x1b08   :  { %1615 = vst.msk [vmem:[%s2733_s10 + $0x30] sm:$0xff] %vm1608_vm7, %v1602_v23  ;;  %v1605_v29 = vadd.f32 %v1940_v28, %v1659_v49  ;;  %v1596_v30 = vpop.f32.mrb[43].mxu0 }
0x1b09   :  { %1613 = vst.msk [vmem:[%s2733_s10 + $0x20] sm:$0xff] %vm1608_vm7, %v1594_v26  ;;  %v1597_v31 = vadd.f32 %v1659_v49, %v1596_v30 }
0x1b0a   :  { %1616 = vst.msk [vmem:[%s2733_s10 + $0x38] sm:$0xff] %vm1608_vm7, %v1605_v29 }
0x1b0b   :  { %1614 = vst.msk [vmem:[%s2733_s10 + $0x28] sm:$0xff] %vm1608_vm7, %v1597_v31 }
0x1b0c   :  { %1621 = vsyncpa [#allocation3], 1 }
0x1b0d   :  { %1622 = vsyncpa [#allocation5], 1 }
0x1b0e   :  { %1623 = vsyncpa [#allocation8], 1 }

</bundles_post_ra>
